<compile_context>
chip_gen: v7x
topology: tpu7x:2x2x1
jax: 0.10.0
libtpu: 0.0.40
codegen_flags: <defaults>
</compile_context>

<pallas_src>
import functools

import jax
import jax.numpy as jnp
from jax.experimental import pallas as pl
from jax.experimental.pallas import tpu as pltpu


# --------------------------------------------------------------------------
# Small helpers: padding + per-generation hardware heuristics.
# --------------------------------------------------------------------------
def _round_up(x, m):
    return ((x + m - 1) // m) * m


def _tpu_generation():
    try:
        kind = jax.devices()[0].device_kind.lower()
    except Exception:
        return "unknown"
    if "v5" in kind:
        return "v5"
    if "v6" in kind:
        return "v6"
    if "v7" in kind:
        return "v7"
    return "unknown"


def _default_act_dtype(gen=None):
    gen = gen or _tpu_generation()
    # v5e has no bf16 VPU/EUP path -> keep element-wise math in f32 there.
    return jnp.float32 if gen in ("v5", "unknown") else jnp.bfloat16


def _default_block_rows(gen=None):
    gen = gen or _tpu_generation()
    # v5e/v6e: 128 MiB VMEM -> big row tiles; v7x: 64 MiB -> a bit smaller.
    return {"v5": 512, "v6": 512, "v7": 256}.get(gen, 256)


def _vmem_capacity_bytes():
    try:
        return int(pltpu.get_tpu_info().vmem_capacity_bytes)
    except Exception:
        return 64 * 1024 * 1024  # conservative (v7x per-TC)


# --------------------------------------------------------------------------
# Pallas kernel: fused encoder + decoder over one batch row-tile.
# --------------------------------------------------------------------------
def _ae_kernel(enc_layers, dec_layers, n_params, act_dtype, x_ref, *refs):
    """enc_layers / dec_layers: static tuples of (w_idx, b_idx_or_None, act_name)."""
    param_refs = refs[:n_params]
    lat_ref = refs[n_params]
    out_ref = refs[n_params + 1]

    def apply_stack(h, layers):
        for (w_idx, b_idx, act) in layers:
            w = param_refs[w_idx][...]                       # resident weight tile
            # MXU matmul with f32 accumulation.
            h = jnp.dot(h.astype(w.dtype), w, preferred_element_type=jnp.float32)
            # Downcast once per layer; bias/activation in act_dtype (bf16 on v6e/v7x,
            # f32 on v5e) to keep the element-wise chain cheap.
            h = h.astype(act_dtype)
            if b_idx is not None:
                h = h + param_refs[b_idx][...].astype(act_dtype)
            if act == "RELU":
                h = jnp.maximum(h, 0.0)
            elif act == "SIGM":
                h = jax.nn.sigmoid(h)
            # Dropout layers are identity in eval mode -> not materialized here.
        return h

    x = x_ref[...].astype(act_dtype)                          # [TB, dim_p]
    z = apply_stack(x, enc_layers)                            # encoder -> latent
    lat_ref[...] = z.astype(lat_ref.dtype)
    y = apply_stack(z, dec_layers)                            # decoder -> recon
    out_ref[...] = y.astype(out_ref.dtype)


# --------------------------------------------------------------------------
# Build parameters following the PyTorch AutoEncoder constructor semantics.
# All weight / bias feature dims are zero-padded to multiples of `pad_to`
# (exact: padded rows/cols are zero, so the padded model computes the same
# values on the original coordinates).
# --------------------------------------------------------------------------
def build_autoencoder(key, dim, layers_list, latent_dim, last_isSigm=True,
                      weight_dtype=jnp.bfloat16, pad_to=128):
    enc_struct = []   # (in_f, out_f, bias, act) in encoder order
    dec_struct = []   # mirrored via insert(0, ...) exactly like the nn.Module
    last_dim = dim
    for i, layer in enumerate(layers_list):
        if layer["type"] == "DROP":
            prob = layer["prob"]
            assert isinstance(prob, float) and 0.0 <= prob <= 1.0
            # eval-mode dropout == identity; nothing added to the compute graph
        elif layer["type"] == "DENSE":
            act = layer["act_funtion"]
            assert act in ("RELU", "SIGM")
            enc_struct.append((last_dim, layer["features"], layer["bias"], act))
            dec_act = "SIGM" if (i == 0 and last_isSigm) else act
            dec_struct.insert(0, (layer["features"], last_dim, layer["bias"], dec_act))
            last_dim = layer["features"]
        else:
            # TODO(synk): KCOMP / KCompetitiveLayer class body is not provided in the spec.
            raise ValueError(f"layer type {layer['type']!r} not supported")
    assert last_dim == latent_dim, (last_dim, latent_dim)

    params = []
    enc_layers, dec_layers = [], []

    def add_linear(k, in_f, out_f, bias, act):
        kw, kb = jax.random.split(k)
        bound = 1.0 / (in_f ** 0.5)                        # PyTorch nn.Linear default init
        in_p, out_p = _round_up(in_f, pad_to), _round_up(out_f, pad_to)
        w = jax.random.uniform(kw, (in_f, out_f), jnp.float32, -bound, bound)
        w = jnp.pad(w, ((0, in_p - in_f), (0, out_p - out_f)))   # zero pad -> exact
        params.append(w.astype(weight_dtype))              # stored transposed: [in, out]
        w_idx = len(params) - 1
        b_idx = None
        if bias:
            b = jax.random.uniform(kb, (1, out_f), jnp.float32, -bound, bound)
            b = jnp.pad(b, ((0, 0), (0, out_p - out_f)))
            params.append(b)                                # biases kept in f32
            b_idx = len(params) - 1
        return (w_idx, b_idx, act)

    keys = jax.random.split(key, len(enc_struct) + len(dec_struct))
    ki = 0
    for s in enc_struct:
        enc_layers.append(add_linear(keys[ki], *s)); ki += 1
    for s in dec_struct:
        dec_layers.append(add_linear(keys[ki], *s)); ki += 1

    return params, tuple(enc_layers), tuple(dec_layers)


# --------------------------------------------------------------------------
# Wrapper: row-tiled pallas_call over the (padded) batch dimension.
# --------------------------------------------------------------------------
def autoencoder_forward(x, params, enc_layers, dec_layers, latent_dim, *,
                        block_rows=None, vmem_limit_bytes=None,
                        act_dtype=None, pad_to=128):
    B, dim = x.shape
    gen = _tpu_generation()
    if act_dtype is None:
        act_dtype = _default_act_dtype(gen)
    if block_rows is None:
        block_rows = _default_block_rows(gen)

    dim_p = _round_up(dim, pad_to)
    latent_p = _round_up(latent_dim, pad_to)

    # Demo-scale batches -> single grid step; otherwise keep the per-gen tile size
    # (>=128 rows, filling the MXU M dim) and pad the batch up to a multiple of it.
    if B <= block_rows:
        block_rows = _round_up(B, 8)
    B_p = _round_up(B, block_rows)

    x_p = x
    if (B_p, dim_p) != (B, dim):
        x_p = jnp.pad(x, ((0, B_p - B), (0, dim_p - dim)))

    n_params = len(params)
    grid = (B_p // block_rows,)

    def row_spec(feat):
        return pl.BlockSpec((block_rows, feat), lambda i: (i, 0))

    def param_specs(buffer_count):
        # Weights / biases: full-array blocks (constant index map -> stay resident).
        if buffer_count is None:
            return [pl.BlockSpec(p.shape, lambda i: (0, 0)) for p in params]
        return [pl.BlockSpec(p.shape, lambda i: (0, 0),
                             pipeline_mode=pl.Buffered(buffer_count))
                for p in params]

    # VMEM budget: resident weights (ideally single-buffered) + double-buffered
    # row tiles (x in, latent out, reconstruction out) + headroom, clamped to the
    # physical VMEM capacity of this generation.
    weight_bytes = sum(int(p.size) * p.dtype.itemsize for p in params)
    io_bytes = 2 * block_rows * (dim_p + latent_p + dim_p) * 4
    if vmem_limit_bytes is None:
        cap = _vmem_capacity_bytes()
        requested = weight_bytes + io_bytes + (8 << 20)
        vmem_limit_bytes = max(32 << 20, min(requested, int(cap * 0.9)))

    # Advisory cost estimate (helps XLA schedule around the custom call).
    flops, transcendentals = 0, 0
    for (w_idx, _b, act) in list(enc_layers) + list(dec_layers):
        in_f, out_f = params[w_idx].shape
        flops += 2 * B_p * in_f * out_f
        if act == "SIGM":
            transcendentals += B_p * out_f
    bytes_accessed = (int(x_p.size) * 4 + weight_bytes
                      + B_p * latent_p * 4 + B_p * dim_p * 4)
    ce = pl.CostEstimate(flops=flops, transcendentals=transcendentals,
                         bytes_accessed=bytes_accessed)

    kern = functools.partial(_ae_kernel, enc_layers, dec_layers, n_params, act_dtype)
    out_shape = (jax.ShapeDtypeStruct((B_p, latent_p), jnp.float32),
                 jax.ShapeDtypeStruct((B_p, dim_p), jnp.float32))
    cparams = pltpu.CompilerParams(
        dimension_semantics=("parallel",),
        vmem_limit_bytes=int(vmem_limit_bytes))

    def run(weight_buffers):
        # TODO(synk): if still DMA-exposed on v7x, sweep pipeline depth on the x spec.
        return pl.pallas_call(
            kern,
            out_shape=out_shape,
            grid=grid,
            in_specs=[row_spec(dim_p)] + param_specs(weight_buffers),
            out_specs=(row_spec(latent_p), row_spec(dim_p)),
            compiler_params=cparams,
            cost_estimate=ce,
        )(x_p, *params)

    try:
        # Constant-index weight blocks: single-buffer to halve their VMEM footprint.
        x_latent_p, x_hat_p = run(1)
        jax.block_until_ready((x_latent_p, x_hat_p))
    except Exception:
        x_latent_p, x_hat_p = run(None)

    x_latent = x_latent_p[:B, :latent_dim]
    x_hat = x_hat_p[:B, :dim]
    return {"x_input": x, "x_latent": x_latent, "x_output": x_hat}


# --------------------------------------------------------------------------
# Pure-JAX reference mirroring the kernel's dtype policy (sanity check).
# --------------------------------------------------------------------------
def _reference_forward(x_padded, params, enc_layers, dec_layers, act_dtype):
    def apply_stack(h, layers):
        for (w_idx, b_idx, act) in layers:
            w = params[w_idx]
            h = jnp.dot(h.astype(w.dtype), w, preferred_element_type=jnp.float32)
            h = h.astype(act_dtype)
            if b_idx is not None:
                h = h + params[b_idx].astype(act_dtype)
            if act == "RELU":
                h = jnp.maximum(h, 0.0)
            elif act == "SIGM":
                h = jax.nn.sigmoid(h)
        return h
    z = apply_stack(x_padded.astype(act_dtype), enc_layers)
    y = apply_stack(z, dec_layers)
    return z.astype(jnp.float32), y.astype(jnp.float32)


# --------------------------------------------------------------------------
if __name__ == "__main__":
    # Small shapes consistent with the module: batch=128, input dim=64,
    # layers_list = [DENSE(128, RELU), DROP(0.2), DENSE(32, RELU)], latent=32.
    B, dim, hidden, latent = 128, 64, 128, 32
    layers_list = [
        dict(type="DENSE", features=hidden, act_funtion="RELU", bias=True),
        dict(type="DROP", prob=0.2),
        dict(type="DENSE", features=latent, act_funtion="RELU", bias=True),
    ]

    key = jax.random.PRNGKey(0)
    k_x, k_p = jax.random.split(key)
    x = jax.random.normal(k_x, (B, dim), jnp.float32)

    params, enc_layers, dec_layers = build_autoencoder(
        k_p, dim, layers_list, latent_dim=latent, last_isSigm=True)

    act_dtype = _default_act_dtype()
    out = autoencoder_forward(x, params, enc_layers, dec_layers, latent,
                              act_dtype=act_dtype)
    jax.block_until_ready(out)

    assert out["x_input"].shape == (B, dim)
    assert out["x_latent"].shape == (B, latent)
    assert out["x_output"].shape == (B, dim)

    # Reference on the same (zero-padded) parameters, sliced back to true dims.
    dim_p = params[enc_layers[0][0]].shape[0]
    x_pad = jnp.pad(x, ((0, 0), (0, dim_p - dim)))
    z_ref, y_ref = _reference_forward(x_pad, params, enc_layers, dec_layers, act_dtype)
    z_ref, y_ref = z_ref[:, :latent], y_ref[:, :dim]

    assert jnp.allclose(out["x_latent"], z_ref, atol=2e-2, rtol=2e-2)
    assert jnp.allclose(out["x_output"], y_ref, atol=2e-2, rtol=2e-2)

    print("KERNEL_OK")
</pallas_src>

<mosaic_0001>
module attributes {stable_mosaic.version = 11 : i64} {
  func.func @_ae_kernel(%arg0: i32, %arg1: memref<128x128xf32, #tpu.memory_space<vmem>>, %arg2: memref<128x128xbf16, #tpu.memory_space<vmem>>, %arg3: memref<1x128xf32, #tpu.memory_space<vmem>>, %arg4: memref<128x128xbf16, #tpu.memory_space<vmem>>, %arg5: memref<1x128xf32, #tpu.memory_space<vmem>>, %arg6: memref<128x128xbf16, #tpu.memory_space<vmem>>, %arg7: memref<1x128xf32, #tpu.memory_space<vmem>>, %arg8: memref<128x128xbf16, #tpu.memory_space<vmem>>, %arg9: memref<1x128xf32, #tpu.memory_space<vmem>>, %arg10: memref<128x128xf32, #tpu.memory_space<vmem>>, %arg11: memref<128x128xf32, #tpu.memory_space<vmem>>) attributes {dimension_semantics = [#tpu.dimension_semantics<parallel>], iteration_bounds = array<i64: 1>, scalar_prefetch = 0 : i64, scratch_operands = 0 : i64, tpu.core_type = #tpu.core_type<tc>, window_params = [{transform_indices = @transform_0, window_bounds = array<i64: 128, 128>}, {pipeline_mode = #tpu.pipeline_mode<synchronous>, transform_indices = @transform_1, window_bounds = array<i64: 128, 128>}, {pipeline_mode = #tpu.pipeline_mode<synchronous>, transform_indices = @transform_2, window_bounds = array<i64: 1, 128>}, {pipeline_mode = #tpu.pipeline_mode<synchronous>, transform_indices = @transform_3, window_bounds = array<i64: 128, 128>}, {pipeline_mode = #tpu.pipeline_mode<synchronous>, transform_indices = @transform_4, window_bounds = array<i64: 1, 128>}, {pipeline_mode = #tpu.pipeline_mode<synchronous>, transform_indices = @transform_5, window_bounds = array<i64: 128, 128>}, {pipeline_mode = #tpu.pipeline_mode<synchronous>, transform_indices = @transform_6, window_bounds = array<i64: 1, 128>}, {pipeline_mode = #tpu.pipeline_mode<synchronous>, transform_indices = @transform_7, window_bounds = array<i64: 128, 128>}, {pipeline_mode = #tpu.pipeline_mode<synchronous>, transform_indices = @transform_8, window_bounds = array<i64: 1, 128>}, {transform_indices = @transform_9, window_bounds = array<i64: 128, 128>}, {transform_indices = @transform_10, window_bounds = array<i64: 128, 128>}]} {
    %c0 = arith.constant 0 : index
    %c0_0 = arith.constant 0 : index
    %0 = vector.load %arg1[%c0, %c0_0] : memref<128x128xf32, #tpu.memory_space<vmem>>, vector<128x128xf32>
    %c0_1 = arith.constant 0 : index
    %c0_2 = arith.constant 0 : index
    %1 = vector.load %arg2[%c0_1, %c0_2] : memref<128x128xbf16, #tpu.memory_space<vmem>>, vector<128x128xbf16>
    %2 = arith.truncf %0 : vector<128x128xf32> to vector<128x128xbf16>
    %cst = arith.constant dense<0.000000e+00> : vector<128x128xf32>
    %3 = tpu.matmul %2, %1, %cst {dimension_numbers = #tpu.dot_dimension_numbers<[1], [0], [0], [1], [0, 0, 1, 1], [], []>} : vector<128x128xbf16>, vector<128x128xbf16>, vector<128x128xf32> -> vector<128x128xf32>
    %c0_3 = arith.constant 0 : index
    %c0_4 = arith.constant 0 : index
    %4 = vector.load %arg3[%c0_3, %c0_4] : memref<1x128xf32, #tpu.memory_space<vmem>>, vector<1x128xf32>
    %5 = vector.broadcast %4 : vector<1x128xf32> to vector<128x128xf32>
    %6 = arith.addf %3, %5 : vector<128x128xf32>
    %cst_5 = arith.constant 0.000000e+00 : f32
    %7 = vector.broadcast %cst_5 : f32 to vector<128x128xf32>
    %8 = arith.maximumf %6, %7 : vector<128x128xf32>
    %c0_6 = arith.constant 0 : index
    %c0_7 = arith.constant 0 : index
    %9 = vector.load %arg4[%c0_6, %c0_7] : memref<128x128xbf16, #tpu.memory_space<vmem>>, vector<128x128xbf16>
    %10 = arith.truncf %8 : vector<128x128xf32> to vector<128x128xbf16>
    %cst_8 = arith.constant dense<0.000000e+00> : vector<128x128xf32>
    %11 = tpu.matmul %10, %9, %cst_8 {dimension_numbers = #tpu.dot_dimension_numbers<[1], [0], [0], [1], [0, 0, 1, 1], [], []>} : vector<128x128xbf16>, vector<128x128xbf16>, vector<128x128xf32> -> vector<128x128xf32>
    %c0_9 = arith.constant 0 : index
    %c0_10 = arith.constant 0 : index
    %12 = vector.load %arg5[%c0_9, %c0_10] : memref<1x128xf32, #tpu.memory_space<vmem>>, vector<1x128xf32>
    %13 = vector.broadcast %12 : vector<1x128xf32> to vector<128x128xf32>
    %14 = arith.addf %11, %13 : vector<128x128xf32>
    %cst_11 = arith.constant 0.000000e+00 : f32
    %15 = vector.broadcast %cst_11 : f32 to vector<128x128xf32>
    %16 = arith.maximumf %14, %15 : vector<128x128xf32>
    %c0_12 = arith.constant 0 : index
    %c0_13 = arith.constant 0 : index
    %17 = vector.load %arg10[%c0_12, %c0_13] : memref<128x128xf32, #tpu.memory_space<vmem>>, vector<128x128xf32>
    tpu.vector_store %arg10[%c0_12, %c0_13], %16 {strides = array<i32>} : memref<128x128xf32, #tpu.memory_space<vmem>>, vector<128x128xf32>,
    %c0_14 = arith.constant 0 : index
    %c0_15 = arith.constant 0 : index
    %18 = vector.load %arg6[%c0_14, %c0_15] : memref<128x128xbf16, #tpu.memory_space<vmem>>, vector<128x128xbf16>
    %19 = arith.truncf %16 : vector<128x128xf32> to vector<128x128xbf16>
    %cst_16 = arith.constant dense<0.000000e+00> : vector<128x128xf32>
    %20 = tpu.matmul %19, %18, %cst_16 {dimension_numbers = #tpu.dot_dimension_numbers<[1], [0], [0], [1], [0, 0, 1, 1], [], []>} : vector<128x128xbf16>, vector<128x128xbf16>, vector<128x128xf32> -> vector<128x128xf32>
    %c0_17 = arith.constant 0 : index
    %c0_18 = arith.constant 0 : index
    %21 = vector.load %arg7[%c0_17, %c0_18] : memref<1x128xf32, #tpu.memory_space<vmem>>, vector<1x128xf32>
    %22 = vector.broadcast %21 : vector<1x128xf32> to vector<128x128xf32>
    %23 = arith.addf %20, %22 : vector<128x128xf32>
    %cst_19 = arith.constant 0.000000e+00 : f32
    %24 = vector.broadcast %cst_19 : f32 to vector<128x128xf32>
    %25 = arith.maximumf %23, %24 : vector<128x128xf32>
    %c0_20 = arith.constant 0 : index
    %c0_21 = arith.constant 0 : index
    %26 = vector.load %arg8[%c0_20, %c0_21] : memref<128x128xbf16, #tpu.memory_space<vmem>>, vector<128x128xbf16>
    %27 = arith.truncf %25 : vector<128x128xf32> to vector<128x128xbf16>
    %cst_22 = arith.constant dense<0.000000e+00> : vector<128x128xf32>
    %28 = tpu.matmul %27, %26, %cst_22 {dimension_numbers = #tpu.dot_dimension_numbers<[1], [0], [0], [1], [0, 0, 1, 1], [], []>} : vector<128x128xbf16>, vector<128x128xbf16>, vector<128x128xf32> -> vector<128x128xf32>
    %c0_23 = arith.constant 0 : index
    %c0_24 = arith.constant 0 : index
    %29 = vector.load %arg9[%c0_23, %c0_24] : memref<1x128xf32, #tpu.memory_space<vmem>>, vector<1x128xf32>
    %30 = vector.broadcast %29 : vector<1x128xf32> to vector<128x128xf32>
    %31 = arith.addf %28, %30 : vector<128x128xf32>
    %32 = arith.negf %31 : vector<128x128xf32>
    %33 = math.exp %32 : vector<128x128xf32>
    %cst_25 = arith.constant 1.000000e+00 : f32
    %34 = vector.broadcast %cst_25 : f32 to vector<128x128xf32>
    %35 = arith.addf %34, %33 : vector<128x128xf32>
    %36 = arith.divf %34, %35 : vector<128x128xf32>
    %c0_26 = arith.constant 0 : index
    %c0_27 = arith.constant 0 : index
    %37 = vector.load %arg11[%c0_26, %c0_27] : memref<128x128xf32, #tpu.memory_space<vmem>>, vector<128x128xf32>
    tpu.vector_store %arg11[%c0_26, %c0_27], %36 {strides = array<i32>} : memref<128x128xf32, #tpu.memory_space<vmem>>, vector<128x128xf32>,
    return
  }
  func.func @transform_0(%arg0: i32) -> (i32, i32) {
    %c0_i32 = arith.constant 0 : i32
    %c0_i32_0 = arith.constant 0 : i32
    return %arg0, %c0_i32 : i32, i32
  }
  func.func @transform_1(%arg0: i32) -> (i32, i32) {
    %c0_i32 = arith.constant 0 : i32
    %c0_i32_0 = arith.constant 0 : i32
    %c0_i32_1 = arith.constant 0 : i32
    return %c0_i32, %c0_i32_0 : i32, i32
  }
  func.func @transform_2(%arg0: i32) -> (i32, i32) {
    %c0_i32 = arith.constant 0 : i32
    %c0_i32_0 = arith.constant 0 : i32
    %c0_i32_1 = arith.constant 0 : i32
    return %c0_i32, %c0_i32_0 : i32, i32
  }
  func.func @transform_3(%arg0: i32) -> (i32, i32) {
    %c0_i32 = arith.constant 0 : i32
    %c0_i32_0 = arith.constant 0 : i32
    %c0_i32_1 = arith.constant 0 : i32
    return %c0_i32, %c0_i32_0 : i32, i32
  }
  func.func @transform_4(%arg0: i32) -> (i32, i32) {
    %c0_i32 = arith.constant 0 : i32
    %c0_i32_0 = arith.constant 0 : i32
    %c0_i32_1 = arith.constant 0 : i32
    return %c0_i32, %c0_i32_0 : i32, i32
  }
  func.func @transform_5(%arg0: i32) -> (i32, i32) {
    %c0_i32 = arith.constant 0 : i32
    %c0_i32_0 = arith.constant 0 : i32
    %c0_i32_1 = arith.constant 0 : i32
    return %c0_i32, %c0_i32_0 : i32, i32
  }
  func.func @transform_6(%arg0: i32) -> (i32, i32) {
    %c0_i32 = arith.constant 0 : i32
    %c0_i32_0 = arith.constant 0 : i32
    %c0_i32_1 = arith.constant 0 : i32
    return %c0_i32, %c0_i32_0 : i32, i32
  }
  func.func @transform_7(%arg0: i32) -> (i32, i32) {
    %c0_i32 = arith.constant 0 : i32
    %c0_i32_0 = arith.constant 0 : i32
    %c0_i32_1 = arith.constant 0 : i32
    return %c0_i32, %c0_i32_0 : i32, i32
  }
  func.func @transform_8(%arg0: i32) -> (i32, i32) {
    %c0_i32 = arith.constant 0 : i32
    %c0_i32_0 = arith.constant 0 : i32
    %c0_i32_1 = arith.constant 0 : i32
    return %c0_i32, %c0_i32_0 : i32, i32
  }
  func.func @transform_9(%arg0: i32) -> (i32, i32) {
    %c0_i32 = arith.constant 0 : i32
    %c0_i32_0 = arith.constant 0 : i32
    return %arg0, %c0_i32 : i32, i32
  }
  func.func @transform_10(%arg0: i32) -> (i32, i32) {
    %c0_i32 = arith.constant 0 : i32
    %c0_i32_0 = arith.constant 0 : i32
    return %arg0, %c0_i32 : i32, i32
  }
}

module attributes {stable_mosaic.version = 11 : i64} {
  func.func @_ae_kernel(%arg0: i32, %arg1: memref<128x128xf32, #tpu.memory_space<vmem>>, %arg2: memref<128x128xbf16, #tpu.memory_space<vmem>>, %arg3: memref<1x128xf32, #tpu.memory_space<vmem>>, %arg4: memref<128x128xbf16, #tpu.memory_space<vmem>>, %arg5: memref<1x128xf32, #tpu.memory_space<vmem>>, %arg6: memref<128x128xbf16, #tpu.memory_space<vmem>>, %arg7: memref<1x128xf32, #tpu.memory_space<vmem>>, %arg8: memref<128x128xbf16, #tpu.memory_space<vmem>>, %arg9: memref<1x128xf32, #tpu.memory_space<vmem>>, %arg10: memref<128x128xf32, #tpu.memory_space<vmem>>, %arg11: memref<128x128xf32, #tpu.memory_space<vmem>>) attributes {dimension_semantics = [#tpu.dimension_semantics<parallel>], iteration_bounds = array<i64: 1>, scalar_prefetch = 0 : i64, scratch_operands = 0 : i64, tpu.core_type = #tpu.core_type<tc>, window_params = [{transform_indices = @transform_0, window_bounds = array<i64: 128, 128>}, {pipeline_mode = #tpu.pipeline_mode<synchronous>, transform_indices = @transform_1, window_bounds = array<i64: 128, 128>}, {pipeline_mode = #tpu.pipeline_mode<synchronous>, transform_indices = @transform_2, window_bounds = array<i64: 1, 128>}, {pipeline_mode = #tpu.pipeline_mode<synchronous>, transform_indices = @transform_3, window_bounds = array<i64: 128, 128>}, {pipeline_mode = #tpu.pipeline_mode<synchronous>, transform_indices = @transform_4, window_bounds = array<i64: 1, 128>}, {pipeline_mode = #tpu.pipeline_mode<synchronous>, transform_indices = @transform_5, window_bounds = array<i64: 128, 128>}, {pipeline_mode = #tpu.pipeline_mode<synchronous>, transform_indices = @transform_6, window_bounds = array<i64: 1, 128>}, {pipeline_mode = #tpu.pipeline_mode<synchronous>, transform_indices = @transform_7, window_bounds = array<i64: 128, 128>}, {pipeline_mode = #tpu.pipeline_mode<synchronous>, transform_indices = @transform_8, window_bounds = array<i64: 1, 128>}, {transform_indices = @transform_9, window_bounds = array<i64: 128, 128>}, {transform_indices = @transform_10, window_bounds = array<i64: 128, 128>}]} {
    %c0 = arith.constant 0 : index
    %c0_0 = arith.constant 0 : index
    %0 = vector.load %arg1[%c0, %c0_0] : memref<128x128xf32, #tpu.memory_space<vmem>>, vector<128x128xf32>
    %c0_1 = arith.constant 0 : index
    %c0_2 = arith.constant 0 : index
    %1 = vector.load %arg2[%c0_1, %c0_2] : memref<128x128xbf16, #tpu.memory_space<vmem>>, vector<128x128xbf16>
    %2 = arith.truncf %0 : vector<128x128xf32> to vector<128x128xbf16>
    %cst = arith.constant dense<0.000000e+00> : vector<128x128xf32>
    %3 = tpu.matmul %2, %1, %cst {dimension_numbers = #tpu.dot_dimension_numbers<[1], [0], [0], [1], [0, 0, 1, 1], [], []>} : vector<128x128xbf16>, vector<128x128xbf16>, vector<128x128xf32> -> vector<128x128xf32>
    %c0_3 = arith.constant 0 : index
    %c0_4 = arith.constant 0 : index
    %4 = vector.load %arg3[%c0_3, %c0_4] : memref<1x128xf32, #tpu.memory_space<vmem>>, vector<1x128xf32>
    %5 = vector.broadcast %4 : vector<1x128xf32> to vector<128x128xf32>
    %6 = arith.addf %3, %5 : vector<128x128xf32>
    %cst_5 = arith.constant 0.000000e+00 : f32
    %7 = vector.broadcast %cst_5 : f32 to vector<128x128xf32>
    %8 = arith.maximumf %6, %7 : vector<128x128xf32>
    %c0_6 = arith.constant 0 : index
    %c0_7 = arith.constant 0 : index
    %9 = vector.load %arg4[%c0_6, %c0_7] : memref<128x128xbf16, #tpu.memory_space<vmem>>, vector<128x128xbf16>
    %10 = arith.truncf %8 : vector<128x128xf32> to vector<128x128xbf16>
    %cst_8 = arith.constant dense<0.000000e+00> : vector<128x128xf32>
    %11 = tpu.matmul %10, %9, %cst_8 {dimension_numbers = #tpu.dot_dimension_numbers<[1], [0], [0], [1], [0, 0, 1, 1], [], []>} : vector<128x128xbf16>, vector<128x128xbf16>, vector<128x128xf32> -> vector<128x128xf32>
    %c0_9 = arith.constant 0 : index
    %c0_10 = arith.constant 0 : index
    %12 = vector.load %arg5[%c0_9, %c0_10] : memref<1x128xf32, #tpu.memory_space<vmem>>, vector<1x128xf32>
    %13 = vector.broadcast %12 : vector<1x128xf32> to vector<128x128xf32>
    %14 = arith.addf %11, %13 : vector<128x128xf32>
    %cst_11 = arith.constant 0.000000e+00 : f32
    %15 = vector.broadcast %cst_11 : f32 to vector<128x128xf32>
    %16 = arith.maximumf %14, %15 : vector<128x128xf32>
    %c0_12 = arith.constant 0 : index
    %c0_13 = arith.constant 0 : index
    %17 = vector.load %arg10[%c0_12, %c0_13] : memref<128x128xf32, #tpu.memory_space<vmem>>, vector<128x128xf32>
    tpu.vector_store %arg10[%c0_12, %c0_13], %16 {strides = array<i32>} : memref<128x128xf32, #tpu.memory_space<vmem>>, vector<128x128xf32>,
    %c0_14 = arith.constant 0 : index
    %c0_15 = arith.constant 0 : index
    %18 = vector.load %arg6[%c0_14, %c0_15] : memref<128x128xbf16, #tpu.memory_space<vmem>>, vector<128x128xbf16>
    %19 = arith.truncf %16 : vector<128x128xf32> to vector<128x128xbf16>
    %cst_16 = arith.constant dense<0.000000e+00> : vector<128x128xf32>
    %20 = tpu.matmul %19, %18, %cst_16 {dimension_numbers = #tpu.dot_dimension_numbers<[1], [0], [0], [1], [0, 0, 1, 1], [], []>} : vector<128x128xbf16>, vector<128x128xbf16>, vector<128x128xf32> -> vector<128x128xf32>
    %c0_17 = arith.constant 0 : index
    %c0_18 = arith.constant 0 : index
    %21 = vector.load %arg7[%c0_17, %c0_18] : memref<1x128xf32, #tpu.memory_space<vmem>>, vector<1x128xf32>
    %22 = vector.broadcast %21 : vector<1x128xf32> to vector<128x128xf32>
    %23 = arith.addf %20, %22 : vector<128x128xf32>
    %cst_19 = arith.constant 0.000000e+00 : f32
    %24 = vector.broadcast %cst_19 : f32 to vector<128x128xf32>
    %25 = arith.maximumf %23, %24 : vector<128x128xf32>
    %c0_20 = arith.constant 0 : index
    %c0_21 = arith.constant 0 : index
    %26 = vector.load %arg8[%c0_20, %c0_21] : memref<128x128xbf16, #tpu.memory_space<vmem>>, vector<128x128xbf16>
    %27 = arith.truncf %25 : vector<128x128xf32> to vector<128x128xbf16>
    %cst_22 = arith.constant dense<0.000000e+00> : vector<128x128xf32>
    %28 = tpu.matmul %27, %26, %cst_22 {dimension_numbers = #tpu.dot_dimension_numbers<[1], [0], [0], [1], [0, 0, 1, 1], [], []>} : vector<128x128xbf16>, vector<128x128xbf16>, vector<128x128xf32> -> vector<128x128xf32>
    %c0_23 = arith.constant 0 : index
    %c0_24 = arith.constant 0 : index
    %29 = vector.load %arg9[%c0_23, %c0_24] : memref<1x128xf32, #tpu.memory_space<vmem>>, vector<1x128xf32>
    %30 = vector.broadcast %29 : vector<1x128xf32> to vector<128x128xf32>
    %31 = arith.addf %28, %30 : vector<128x128xf32>
    %32 = arith.negf %31 : vector<128x128xf32>
    %33 = math.exp %32 : vector<128x128xf32>
    %cst_25 = arith.constant 1.000000e+00 : f32
    %34 = vector.broadcast %cst_25 : f32 to vector<128x128xf32>
    %35 = arith.addf %34, %33 : vector<128x128xf32>
    %36 = arith.divf %34, %35 : vector<128x128xf32>
    %c0_26 = arith.constant 0 : index
    %c0_27 = arith.constant 0 : index
    %37 = vector.load %arg11[%c0_26, %c0_27] : memref<128x128xf32, #tpu.memory_space<vmem>>, vector<128x128xf32>
    tpu.vector_store %arg11[%c0_26, %c0_27], %36 {strides = array<i32>} : memref<128x128xf32, #tpu.memory_space<vmem>>, vector<128x128xf32>,
    return
  }
  func.func @transform_0(%arg0: i32) -> (i32, i32) {
    %c0_i32 = arith.constant 0 : i32
    %c0_i32_0 = arith.constant 0 : i32
    return %arg0, %c0_i32 : i32, i32
  }
  func.func @transform_1(%arg0: i32) -> (i32, i32) {
    %c0_i32 = arith.constant 0 : i32
    %c0_i32_0 = arith.constant 0 : i32
    %c0_i32_1 = arith.constant 0 : i32
    return %c0_i32, %c0_i32_0 : i32, i32
  }
  func.func @transform_2(%arg0: i32) -> (i32, i32) {
    %c0_i32 = arith.constant 0 : i32
    %c0_i32_0 = arith.constant 0 : i32
    %c0_i32_1 = arith.constant 0 : i32
    return %c0_i32, %c0_i32_0 : i32, i32
  }
  func.func @transform_3(%arg0: i32) -> (i32, i32) {
    %c0_i32 = arith.constant 0 : i32
    %c0_i32_0 = arith.constant 0 : i32
    %c0_i32_1 = arith.constant 0 : i32
    return %c0_i32, %c0_i32_0 : i32, i32
  }
  func.func @transform_4(%arg0: i32) -> (i32, i32) {
    %c0_i32 = arith.constant 0 : i32
    %c0_i32_0 = arith.constant 0 : i32
    %c0_i32_1 = arith.constant 0 : i32
    return %c0_i32, %c0_i32_0 : i32, i32
  }
  func.func @transform_5(%arg0: i32) -> (i32, i32) {
    %c0_i32 = arith.constant 0 : i32
    %c0_i32_0 = arith.constant 0 : i32
    %c0_i32_1 = arith.constant 0 : i32
    return %c0_i32, %c0_i32_0 : i32, i32
  }
  func.func @transform_6(%arg0: i32) -> (i32, i32) {
    %c0_i32 = arith.constant 0 : i32
    %c0_i32_0 = arith.constant 0 : i32
    %c0_i32_1 = arith.constant 0 : i32
    return %c0_i32, %c0_i32_0 : i32, i32
  }
  func.func @transform_7(%arg0: i32) -> (i32, i32) {
    %c0_i32 = arith.constant 0 : i32
    %c0_i32_0 = arith.constant 0 : i32
    %c0_i32_1 = arith.constant 0 : i32
    return %c0_i32, %c0_i32_0 : i32, i32
  }
  func.func @transform_8(%arg0: i32) -> (i32, i32) {
    %c0_i32 = arith.constant 0 : i32
    %c0_i32_0 = arith.constant 0 : i32
    %c0_i32_1 = arith.constant 0 : i32
    return %c0_i32, %c0_i32_0 : i32, i32
  }
  func.func @transform_9(%arg0: i32) -> (i32, i32) {
    %c0_i32 = arith.constant 0 : i32
    %c0_i32_0 = arith.constant 0 : i32
    return %arg0, %c0_i32 : i32, i32
  }
  func.func @transform_10(%arg0: i32) -> (i32, i32) {
    %c0_i32 = arith.constant 0 : i32
    %c0_i32_0 = arith.constant 0 : i32
    return %arg0, %c0_i32 : i32, i32
  }
}

</mosaic_0001>

<bundles_post_ra>
// kernel: tpu_custom_call.1
= control target key start
LH: loop header
LB: loop body
LE: loop exit
PB: predicated region body
PF: predicated region fallthrough
CT: control target
= control target key end

     0   :  { %16 = vsyncpa [#allocation3], 0  ;;  %s1770_s0 = inlined_call_operand.hbm [shape: f32[128,128], index: 0, kind: input, shape index: {}]   ;;  %s1771_s1 = inlined_call_operand.hbm [shape: bf16[128,128], index: 1, kind: input, shape index: {}]   ;;  %s1772_s2 = inlined_call_operand.vmem [shape: f32[1,128], index: 2, kind: input, shape index: {}]   ;;  %s1773_s3 = inlined_call_operand.hbm [shape: bf16[128,128], index: 3, kind: input, shape index: {}]   ;;  %s1774_s4 = inlined_call_operand.vmem [shape: f32[1,128], index: 4, kind: input, shape index: {}]   ;;  %s1775_s5 = inlined_call_operand.hbm [shape: bf16[128,128], index: 5, kind: input, shape index: {}]   ;;  %s1776_s6 = inlined_call_operand.vmem [shape: f32[1,128], index: 6, kind: input, shape index: {}]   ;;  %s1777_s7 = inlined_call_operand.hbm [shape: bf16[128,128], index: 7, kind: input, shape index: {}]   ;;  %s1778_s8 = inlined_call_operand.vmem [shape: f32[1,128], index: 8, kind: input, shape index: {}]   ;;  %s1779_s9 = inlined_call_operand.hbm [shape: f32[128,128], index: 9, kind: output, shape index: {0}]   ;;  %s1780_s10 = inlined_call_operand.hbm [shape: f32[128,128], index: 10, kind: output, shape index: {1}]  }
   0x1   :  { %17 = vsyncpa [#allocation6], 0 }
   0x2   :  { %18 = vsyncpa [#allocation9], 0 }
   0x3   :  { %19 = vsyncpa [#allocation4], 0 }
   0x4   :  { %20 = vsyncpa [#allocation13], 0  ;;  %s1551_s13 = smov [#allocation5]   ;;  %s1387_s17 = scalar_lea.hbm %s1771_s1, 1024 }
   0x5   :  { %s38_s14 = sshll.u32 %s1551_s13, 4  ;;  %p1388_p0 = scmp.ne.s32.totalorder %s1771_s1, %s1387_s17  ;;  %s39_s14 = int_to_ptr.vmem [resolvable:$true] %s38_s14 }
   0x6   :  { %p1391_p1 = scmp.lt.u32.totalorder %s1387_s17, %s1771_s1 }
   0x8   :  { %p1393_p2 = pnand %p1391_p1, %p1388_p0 }
   0xa   :  { %1396 = shalt.err (!%p1393_p2)
}
   0xb   :  { %s1397_s22 = scalar_lea.vmem %s39_s14, 1024  ;;  %p1402_p4 = scmp.lt.s32.totalorder %s39_s14, %s39_s14 }
   0xc   :  { %p1398_p3 = scmp.ne.s32.totalorder %s39_s14, %s1397_s22  ;;  %p1403_p5 = scmp.lt.s32.totalorder %s1397_s22, %s1397_s22 }
   0xe   :  { %p1404_p6 = por %p1403_p5, %p1402_p4 }
  0x10   :  { %p1405_p7 = pnand %p1404_p6, %p1398_p3 }
  0x12   :  { %1408 = shalt.err (!%p1405_p7)
}
  0x13   :  { %s1552_s23 = smov 64   ;;  %s1553_s24 = smov 4  }
  0x14   :  { %44 = dma.hbm_to_vmem [thread:$0]  %s1771_s1, 1024, %s39_s14, [#allocation6], %s1552_s23, %s1552_s23, %s1553_s24  }
  0x15   :  { %s1554_s27 = smov [#allocation8]   ;;  %s1555_s29 = smov [#allocation2]  }
  0x16   :  { %s66_s28 = sshll.u32 %s1554_s27, 4  ;;  %s26_s30 = sshll.u32 %s1555_s29, 4  ;;  %s67_s28 = int_to_ptr.vmem [resolvable:$true] %s66_s28  ;;  %s27_s30 = int_to_ptr.vmem [resolvable:$true] %s26_s30 }
  0x17   :  { %s1409_s13 = scalar_lea.hbm %s1775_s5, 1024 }
  0x18   :  { %p1410_p8 = scmp.ne.s32.totalorder %s1775_s5, %s1409_s13  ;;  %p1413_p9 = scmp.lt.u32.totalorder %s1409_s13, %s1775_s5 }
  0x1a   :  { %p1415_p10 = pnand %p1413_p9, %p1410_p8 }
  0x1c   :  { %1418 = shalt.err (!%p1415_p10)
}
  0x1d   :  { %s1419_s1 = scalar_lea.vmem %s67_s28, 1024  ;;  %p1424_p12 = scmp.lt.s32.totalorder %s67_s28, %s67_s28 }
  0x1e   :  { %p1420_p11 = scmp.ne.s32.totalorder %s67_s28, %s1419_s1  ;;  %p1425_p13 = scmp.lt.s32.totalorder %s1419_s1, %s1419_s1 }
  0x20   :  { %p1426_p0 = por %p1425_p13, %p1424_p12 }
  0x22   :  { %p1427_p1 = pnand %p1426_p0, %p1420_p11 }
  0x24   :  { %1430 = shalt.err (!%p1427_p1)
}
  0x25   :  { %72 = dma.hbm_to_vmem [thread:$0]  %s1775_s5, 1024, %s67_s28, [#allocation9], %s1552_s23, %s1552_s23, %s1553_s24  }
  0x26   :  { %s1431_s22 = scalar_lea.hbm %s1770_s0, 2048 }
  0x27   :  { %p1432_p2 = scmp.ne.s32.totalorder %s1770_s0, %s1431_s22  ;;  %p1435_p3 = scmp.lt.u32.totalorder %s1431_s22, %s1770_s0 }
  0x29   :  { %p1437_p4 = pnand %p1435_p3, %p1432_p2 }
  0x2b   :  { %1440 = shalt.err (!%p1437_p4)
}
  0x2c   :  { %s1441_s11 = scalar_lea.vmem %s27_s30, 2048  ;;  %p1446_p6 = scmp.lt.s32.totalorder %s27_s30, %s27_s30 }
  0x2d   :  { %p1442_p5 = scmp.ne.s32.totalorder %s27_s30, %s1441_s11  ;;  %p1447_p7 = scmp.lt.s32.totalorder %s1441_s11, %s1441_s11 }
  0x2f   :  { %p1448_p8 = por %p1447_p7, %p1446_p6 }
  0x31   :  { %p1449_p9 = pnand %p1448_p8, %p1442_p5 }
  0x33   :  { %1452 = shalt.err (!%p1449_p9)
}
  0x34   :  { %s1556_s5 = smov 128   ;;  %s1557_s28 = smov 8  }
  0x35   :  { %32 = dma.hbm_to_vmem [thread:$0]  %s1770_s0, 2048, %s27_s30, [#allocation3], %s1556_s5, %s1556_s5, %s1557_s28  }
  0x36   :  { %s1558_s15 = smov [#allocation7]   ;;  %s1559_s17 = smov [#allocation10]  }
  0x37   :  { %s52_s16 = sshll.u32 %s1558_s15, 4  ;;  %s80_s18 = sshll.u32 %s1559_s17, 4  ;;  %s53_s16 = int_to_ptr.vmem [resolvable:$true] %s52_s16  ;;  %s81_s18 = int_to_ptr.vmem [resolvable:$true] %s80_s18 }
  0x38   :  { %s1453_s19 = scalar_lea.hbm %s1773_s3, 1024 }
  0x39   :  { %p1454_p10 = scmp.ne.s32.totalorder %s1773_s3, %s1453_s19  ;;  %p1457_p11 = scmp.lt.u32.totalorder %s1453_s19, %s1773_s3 }
  0x3b   :  { %p1459_p12 = pnand %p1457_p11, %p1454_p10 }
  0x3d   :  { %1462 = shalt.err (!%p1459_p12)
}
  0x3e   :  { %s1463_s0 = scalar_lea.vmem %s53_s16, 1024  ;;  %p1468_p0 = scmp.lt.s32.totalorder %s53_s16, %s53_s16 }
  0x3f   :  { %p1464_p13 = scmp.ne.s32.totalorder %s53_s16, %s1463_s0  ;;  %p1469_p1 = scmp.lt.s32.totalorder %s1463_s0, %s1463_s0 }
  0x41   :  { %p1470_p2 = por %p1469_p1, %p1468_p0 }
  0x43   :  { %p1471_p3 = pnand %p1470_p2, %p1464_p13 }
  0x45   :  { %1474 = shalt.err (!%p1471_p3)
}
  0x46   :  { %58 = dma.hbm_to_vmem [thread:$0]  %s1773_s3, 1024, %s53_s16, [#allocation6], %s1552_s23, %s1552_s23, %s1553_s24  }
  0x47   :  { %s1475_s11 = scalar_lea.hbm %s1777_s7, 1024 }
  0x48   :  { %p1476_p4 = scmp.ne.s32.totalorder %s1777_s7, %s1475_s11  ;;  %p1479_p5 = scmp.lt.u32.totalorder %s1475_s11, %s1777_s7 }
  0x4a   :  { %p1481_p6 = pnand %p1479_p5, %p1476_p4 }
  0x4c   :  { %1484 = shalt.err (!%p1481_p6)
}
  0x4d   :  { %s1485_s1 = scalar_lea.vmem %s81_s18, 1024  ;;  %p1490_p8 = scmp.lt.s32.totalorder %s81_s18, %s81_s18 }
  0x4e   :  { %p1486_p7 = scmp.ne.s32.totalorder %s81_s18, %s1485_s1  ;;  %p1491_p9 = scmp.lt.s32.totalorder %s1485_s1, %s1485_s1 }
  0x50   :  { %p1492_p10 = por %p1491_p9, %p1490_p8 }
  0x52   :  { %p1493_p11 = pnand %p1492_p10, %p1486_p7 }
  0x54   :  { %1496 = shalt.err (!%p1493_p11)
}
  0x55   :  { %86 = dma.hbm_to_vmem [thread:$0]  %s1777_s7, 1024, %s81_s18, [#allocation9], %s1552_s23, %s1552_s23, %s1553_s24  }
  0x56   :  { %1541 = dma.done.wait [#allocation3], 2048  }
  0x57   :  { %1542 = vsyncadd [#allocation3], 4294965248 }
  0x58   :  { %1543 = dma.done.wait [#allocation6], 2048  }
  0x59   :  { %1544 = vsyncadd [#allocation6], 4294965248 }
  0x5a   :  { %1545 = dma.done.wait [#allocation9], 2048  }
  0x5b   :  { %1546 = vsyncadd [#allocation9], 4294965248  ;;  %v1291_v0 = vld [vmem:[#allocation5] sm:$0xff]   ;;  %v1292_v1 = vld [vmem:[#allocation5 + $0x8] sm:$0xff]  }
  0x5c   :  { %1152 = vmatprep.subr.bf16.mxu0 %v1291_v0  ;;  %v1293_v2 = vld [vmem:[#allocation5 + $0x10] sm:$0xff]   ;;  %v1294_v3 = vld [vmem:[#allocation5 + $0x18] sm:$0xff]   ;;  %v105_v4 = vld [vmem:[#allocation2] sm:$0xff] }
  0x5d   :  { %1153 = vmatpush3.bf16.msra.mxu0 %v1291_v0  ;;  %v106_v5 = vld [vmem:[#allocation2 + $0x8] sm:$0xff]  ;;  %v1295_v7 = vld [vmem:[#allocation5 + $0x20] sm:$0xff]   ;;  %v1301_v11 = vld [vmem:[#allocation7 + $0x10] sm:$0xff]  }
  0x5e   :  { %1154 = vmatprep.subr.bf16.mxu0 %v1292_v1  ;;  %v137_v6 = vpack.c.bf16 %v106_v5, %v105_v4  ;;  %v1299_v8 = vld [vmem:[#allocation7] sm:$0xff]   ;;  %v1300_v9 = vld [vmem:[#allocation7 + $0x8] sm:$0xff]   ;;  %v1297_v12 = vld [vmem:[#allocation5 + $0x30] sm:$0xff]  }
  0x5f   :  { %v1296_v10 = vld [vmem:[#allocation5 + $0x28] sm:$0xff]   ;;  %1184 = vmatprep.subr.bf16.mxu1 %v1299_v8  ;;  %v1302_v13 = vld [vmem:[#allocation7 + $0x18] sm:$0xff]   ;;  %v1303_v15 = vld [vmem:[#allocation7 + $0x20] sm:$0xff]  }
  0x60   :  { %1168 = vmatprep.mubr.bf16.mxu0 %v137_v6  ;;  %1185 = vmatpush3.bf16.msra.mxu1 %v1299_v8  ;;  %v1298_v14 = vld [vmem:[#allocation5 + $0x38] sm:$0xff]   ;;  %v107_v16 = vld [vmem:[#allocation2 + $0x10] sm:$0xff]  ;;  %v109_v18 = vld [vmem:[#allocation2 + $0x20] sm:$0xff] }
  0x61   :  { %1155 = vmatpush3.bf16.msra.mxu0 %v1292_v1  ;;  %1186 = vmatprep.subr.bf16.mxu1 %v1300_v9  ;;  %v108_v17 = vld [vmem:[#allocation2 + $0x18] sm:$0xff]  ;;  %v110_v19 = vld [vmem:[#allocation2 + $0x28] sm:$0xff]  ;;  %v111_v23 = vld [vmem:[#allocation2 + $0x30] sm:$0xff] }
  0x62   :  { %1156 = vmatprep.subr.bf16.mxu0 %v1293_v2  ;;  %v1304_v20 = vld [vmem:[#allocation7 + $0x28] sm:$0xff]   ;;  %v138_v21 = vpack.c.bf16 %v108_v17, %v107_v16  ;;  %v139_v22 = vpack.c.bf16 %v110_v19, %v109_v18  ;;  %v112_v24 = vld [vmem:[#allocation2 + $0x38] sm:$0xff]  ;;  %v113_v25 = vld [vmem:[#allocation2 + $0x40] sm:$0xff] }
  0x63   :  { %v114_v26 = vld [vmem:[#allocation2 + $0x48] sm:$0xff]  ;;  %v140_v27 = vpack.c.bf16 %v112_v24, %v111_v23  ;;  %v115_v29 = vld [vmem:[#allocation2 + $0x50] sm:$0xff]  ;;  %v116_v30 = vld [vmem:[#allocation2 + $0x58] sm:$0xff] }
  0x64   :  { %1187 = vmatpush3.bf16.msra.mxu1 %v1300_v9  ;;  %v141_v28 = vpack.c.bf16 %v114_v26, %v113_v25  ;;  %v117_v31 = vld [vmem:[#allocation2 + $0x60] sm:$0xff]  ;;  %v118_v32 = vld [vmem:[#allocation2 + $0x68] sm:$0xff]  ;;  %v142_v33 = vpack.c.bf16 %v116_v30, %v115_v29  ;;  %v119_v35 = vld [vmem:[#allocation2 + $0x70] sm:$0xff] }
  0x65   :  { %1157 = vmatpush3.bf16.msra.mxu0 %v1293_v2  ;;  %1188 = vmatprep.subr.bf16.mxu1 %v1301_v11  ;;  %v143_v34 = vpack.c.bf16 %v118_v32, %v117_v31  ;;  %v120_v36 = vld [vmem:[#allocation2 + $0x78] sm:$0xff]  ;;  %v1305_v38 = vld [vmem:[#allocation7 + $0x30] sm:$0xff]   ;;  %v1307_v40 = vld [vmem:[#allocation8] sm:$0xff]  }
  0x66   :  { %1158 = vmatprep.subr.bf16.mxu0 %v1294_v3  ;;  %v144_v37 = vpack.c.bf16 %v120_v36, %v119_v35  ;;  %v1306_v39 = vld [vmem:[#allocation7 + $0x38] sm:$0xff]   ;;  %v1308_v41 = vld [vmem:[#allocation8 + $0x8] sm:$0xff]   ;;  %v1309_v42 = vld [vmem:[#allocation8 + $0x10] sm:$0xff]  }
  0x67   :  { %v1310_v43 = vld [vmem:[#allocation8 + $0x18] sm:$0xff]   ;;  %v1311_v44 = vld [vmem:[#allocation8 + $0x20] sm:$0xff]   ;;  %v1312_v45 = vld [vmem:[#allocation8 + $0x28] sm:$0xff]  }
  0x68   :  { %1189 = vmatpush3.bf16.msra.mxu1 %v1301_v11  ;;  %v1036_v46 = vld [vmem:[%s1772_s2] ss:$0 sm:$0xff] }
  0x69   :  { %1159 = vmatpush3.bf16.msra.mxu0 %v1294_v3  ;;  %1190 = vmatprep.subr.bf16.mxu1 %v1302_v13 }
  0x6a   :  { %1160 = vmatprep.subr.bf16.mxu0 %v1295_v7 }
  0x6c   :  { %1191 = vmatpush3.bf16.msra.mxu1 %v1302_v13 }
  0x6d   :  { %1161 = vmatpush3.bf16.msra.mxu0 %v1295_v7  ;;  %1192 = vmatprep.subr.bf16.mxu1 %v1303_v15 }
  0x6e   :  { %1162 = vmatprep.subr.bf16.mxu0 %v1296_v10 }
  0x70   :  { %1193 = vmatpush3.bf16.msra.mxu1 %v1303_v15 }
  0x71   :  { %1163 = vmatpush3.bf16.msra.mxu0 %v1296_v10  ;;  %1194 = vmatprep.subr.bf16.mxu1 %v1304_v20 }
  0x72   :  { %1164 = vmatprep.subr.bf16.mxu0 %v1297_v12 }
  0x74   :  { %1195 = vmatpush3.bf16.msra.mxu1 %v1304_v20 }
  0x75   :  { %1165 = vmatpush3.bf16.msra.mxu0 %v1297_v12  ;;  %1196 = vmatprep.subr.bf16.mxu1 %v1305_v38 }
  0x76   :  { %1166 = vmatprep.subr.bf16.mxu0 %v1298_v14 }
  0x78   :  { %1197 = vmatpush3.bf16.msra.mxu1 %v1305_v38 }
  0x79   :  { %1167 = vmatpush3.bf16.msra.mxu0 %v1298_v14  ;;  %1198 = vmatprep.subr.bf16.mxu1 %v1306_v39 }
  0x7a   :  { %1216 = vmatprep.subr.bf16.mxu0 %v1307_v40 }
  0x7c   :  { %1169 = vmatmul.mubr.bf16.vlgmr.msra.gmra.mrb[0].mxu0 %v138_v21  ;;  %1199 = vmatpush3.bf16.msra.mxu1 %v1306_v39  ;;  %v1313_v39 = vld [vmem:[#allocation8 + $0x30] sm:$0xff]  }
  0x7d   :  { %1172 = vmatprep.mubr.bf16.mxu0 %v139_v22  ;;  %1217 = vmatpush3.bf16.msra.mxu0 %v1307_v40  ;;  %v1314_v40 = vld [vmem:[#allocation8 + $0x38] sm:$0xff]  }
  0x7e   :  { %1218 = vmatprep.subr.bf16.mxu0 %v1308_v41 }
  0x81   :  { %1219 = vmatpush3.bf16.msra.mxu0 %v1308_v41  ;;  %v1315_v41 = vld [vmem:[#allocation10] sm:$0xff]  }
  0x82   :  { %1220 = vmatprep.subr.bf16.mxu0 %v1309_v42  ;;  %1248 = vmatprep.subr.bf16.mxu1 %v1315_v41 }
  0x84   :  { %1173 = vmatmul.mubr.bf16.gmra.mrb[4].mxu0 %v140_v27 }
  0x85   :  { %1176 = vmatprep.mubr.bf16.mxu0 %v141_v28  ;;  %1221 = vmatpush3.bf16.msra.mxu0 %v1309_v42  ;;  %v1316_v42 = vld [vmem:[#allocation10 + $0x8] sm:$0xff]  }
  0x86   :  { %1222 = vmatprep.subr.bf16.mxu0 %v1310_v43 }
  0x89   :  { %1223 = vmatpush3.bf16.msra.mxu0 %v1310_v43  ;;  %v1317_v43 = vld [vmem:[#allocation10 + $0x10] sm:$0xff]  }
  0x8a   :  { %1224 = vmatprep.subr.bf16.mxu0 %v1311_v44 }
  0x8c   :  { %1177 = vmatmul.mubr.bf16.gmra.mrb[8].mxu0 %v142_v33 }
  0x8d   :  { %1180 = vmatprep.mubr.bf16.mxu0 %v143_v34  ;;  %1225 = vmatpush3.bf16.msra.mxu0 %v1311_v44  ;;  %v1318_v44 = vld [vmem:[#allocation10 + $0x18] sm:$0xff]  }
  0x8e   :  { %1226 = vmatprep.subr.bf16.mxu0 %v1312_v45 }
  0x91   :  { %1227 = vmatpush3.bf16.msra.mxu0 %v1312_v45  ;;  %v1319_v45 = vld [vmem:[#allocation10 + $0x20] sm:$0xff]  }
  0x92   :  { %1228 = vmatprep.subr.bf16.mxu0 %v1313_v39 }
  0x94   :  { %1181 = vmatmul.mubr.bf16.gmra.mrb[12].mxu0 %v144_v37 }
  0x95   :  { %1229 = vmatpush3.bf16.msra.mxu0 %v1313_v39 }
  0x96   :  { %1230 = vmatprep.subr.bf16.mxu0 %v1314_v40 }
  0x99   :  { %1231 = vmatpush3.bf16.msra.mxu0 %v1314_v40  ;;  %v1321_v40 = vld [vmem:[#allocation10 + $0x30] sm:$0xff]  }
 0x14f   :  { %v1170_v47 = vpop.f32.mrb[0].mxu0 }
 0x150   :  { %v243_v48 = vadd.f32 %v1170_v47, %v1036_v46  ;;  %v234_v49 = vpop.f32.mrb[1].mxu0  ;;  %v1698_v47 = vld [vmem:[%s1774_s4] ss:$0 sm:$0xff] }
 0x151   :  { %v235_v50 = vadd.f32 %v1036_v46, %v234_v49  ;;  %v1171_v51 = vpop.f32.mrb[2].mxu0 }
 0x152   :  { %v246_v52 = vadd.f32 %v1171_v51, %v1036_v46  ;;  %v237_v53 = vpop.f32.mrb[3].mxu0  ;;  %v299_v55 = vmax.f32 %v243_v48, 0.0 }
 0x153   :  { %v238_v54 = vadd.f32 %v1036_v46, %v237_v53  ;;  %v297_v57 = vmax.f32 %v235_v50, 0.0 }
 0x154   :  { %v300_v56 = vmax.f32 %v246_v52, 0.0 }
 0x155   :  { %v298_v58 = vmax.f32 %v238_v54, 0.0 }
 0x156   :  { %v330_v59 = vpack.c.bf16 %v300_v56, %v299_v55 }
 0x157   :  { %v1174_v60 = vpop.f32.mrb[4].mxu0  ;;  %v329_v61 = vpack.c.bf16 %v298_v58, %v297_v57 }
 0x158   :  { %v259_v62 = vadd.f32 %v1174_v60, %v1036_v46  ;;  %v250_v63 = vpop.f32.mrb[5].mxu0 }
 0x159   :  { %v251_v0 = vadd.f32 %v1036_v46, %v250_v63  ;;  %v1175_v1 = vpop.f32.mrb[6].mxu0  ;;  %1200 = vmatprep.mubr.bf16.mxu1 %v329_v61 }
 0x15a   :  { %v262_v2 = vadd.f32 %v1175_v1, %v1036_v46  ;;  %v253_v3 = vpop.f32.mrb[7].mxu0  ;;  %1201 = vmatmul.mubr.bf16.vlgmr.msra.gmra.mrb[0].mxu1 %v330_v59  ;;  %v303_v5 = vmax.f32 %v259_v62, 0.0 }
 0x15b   :  { %v254_v4 = vadd.f32 %v1036_v46, %v253_v3  ;;  %v301_v7 = vmax.f32 %v251_v0, 0.0  ;;  %1249 = vmatpush3.bf16.msra.mxu1 %v1315_v41  ;;  %v1322_v41 = vld [vmem:[#allocation10 + $0x38] sm:$0xff]  }
 0x15c   :  { %v304_v6 = vmax.f32 %v262_v2, 0.0  ;;  %1250 = vmatprep.subr.bf16.mxu1 %v1316_v42 }
 0x15d   :  { %v302_v8 = vmax.f32 %v254_v4, 0.0 }
 0x15e   :  { %v332_v9 = vpack.c.bf16 %v304_v6, %v303_v5 }
 0x15f   :  { %v331_v10 = vpack.c.bf16 %v302_v8, %v301_v7  ;;  %v1178_v11 = vpop.f32.mrb[8].mxu0  ;;  %1251 = vmatpush3.bf16.msra.mxu1 %v1316_v42  ;;  %v1054_v42 = vld [vmem:[%s1776_s6] ss:$0 sm:$0xff]  ;;  %s1560_s6 = smov [#allocation11]  }
 0x160   :  { %v275_v12 = vadd.f32 %v1178_v11, %v1036_v46  ;;  %v266_v13 = vpop.f32.mrb[9].mxu0  ;;  %1252 = vmatprep.subr.bf16.mxu1 %v1317_v43  ;;  %s1006_s14 = sshll.u32 %s1560_s6, 4  ;;  %s1007_s14 = int_to_ptr.vmem [resolvable:$true] %s1006_s14 }
 0x161   :  { %v267_v14 = vadd.f32 %v1036_v46, %v266_v13  ;;  %v1179_v15 = vpop.f32.mrb[10].mxu0  ;;  %1204 = vmatprep.mubr.bf16.mxu1 %v331_v10  ;;  %s1497_s19 = scalar_lea.vmem %s1007_s14, 2048  ;;  %p1502_p13 = scmp.lt.s32.totalorder %s1007_s14, %s1007_s14 }
 0x162   :  { %v278_v16 = vadd.f32 %v1179_v15, %v1036_v46  ;;  %v269_v17 = vpop.f32.mrb[11].mxu0  ;;  %1205 = vmatmul.mubr.bf16.gmra.mrb[4].mxu1 %v332_v9  ;;  %v307_v19 = vmax.f32 %v275_v12, 0.0  ;;  %p1498_p12 = scmp.ne.s32.totalorder %s1007_s14, %s1497_s19  ;;  %p1503_p0 = scmp.lt.s32.totalorder %s1497_s19, %s1497_s19 }
 0x163   :  { %v270_v18 = vadd.f32 %v1036_v46, %v269_v17  ;;  %v305_v21 = vmax.f32 %v267_v14, 0.0  ;;  %1253 = vmatpush3.bf16.msra.mxu1 %v1317_v43 }
 0x164   :  { %v308_v20 = vmax.f32 %v278_v16, 0.0  ;;  %1254 = vmatprep.subr.bf16.mxu1 %v1318_v44  ;;  %p1504_p1 = por %p1503_p0, %p1502_p13 }
 0x165   :  { %v306_v22 = vmax.f32 %v270_v18, 0.0 }
 0x166   :  { %v334_v23 = vpack.c.bf16 %v308_v20, %v307_v19  ;;  %p1505_p2 = pnand %p1504_p1, %p1498_p12 }
 0x167   :  { %v333_v24 = vpack.c.bf16 %v306_v22, %v305_v21  ;;  %v1182_v25 = vpop.f32.mrb[12].mxu0  ;;  %1255 = vmatpush3.bf16.msra.mxu1 %v1318_v44 }
 0x168   :  { %v291_v26 = vadd.f32 %v1182_v25, %v1036_v46  ;;  %v282_v27 = vpop.f32.mrb[13].mxu0  ;;  %1256 = vmatprep.subr.bf16.mxu1 %v1319_v45 }
 0x169   :  { %v283_v28 = vadd.f32 %v1036_v46, %v282_v27  ;;  %v1183_v29 = vpop.f32.mrb[14].mxu0  ;;  %1208 = vmatprep.mubr.bf16.mxu1 %v333_v24 }
 0x16a   :  { %v294_v30 = vadd.f32 %v1183_v29, %v1036_v46  ;;  %v285_v31 = vpop.f32.mrb[15].mxu0  ;;  %1209 = vmatmul.mubr.bf16.gmra.mrb[8].mxu1 %v334_v23  ;;  %v311_v33 = vmax.f32 %v291_v26, 0.0 }
 0x16b   :  { %v286_v32 = vadd.f32 %v1036_v46, %v285_v31  ;;  %v309_v35 = vmax.f32 %v283_v28, 0.0  ;;  %v1320_v46 = vld [vmem:[#allocation10 + $0x28] sm:$0xff]   ;;  %1257 = vmatpush3.bf16.msra.mxu1 %v1319_v45 }
 0x16c   :  { %v312_v34 = vmax.f32 %v294_v30, 0.0  ;;  %1258 = vmatprep.subr.bf16.mxu1 %v1320_v46 }
 0x16d   :  { %v310_v36 = vmax.f32 %v286_v32, 0.0 }
 0x16e   :  { %v336_v37 = vpack.c.bf16 %v312_v34, %v311_v33 }
 0x16f   :  { %v335_v38 = vpack.c.bf16 %v310_v36, %v309_v35  ;;  %1259 = vmatpush3.bf16.msra.mxu1 %v1320_v46 }
 0x170   :  { %1260 = vmatprep.subr.bf16.mxu1 %v1321_v40 }
 0x171   :  { %1212 = vmatprep.mubr.bf16.mxu1 %v335_v38 }
 0x172   :  { %1213 = vmatmul.mubr.bf16.gmra.mrb[12].mxu1 %v336_v37 }
 0x173   :  { %1261 = vmatpush3.bf16.msra.mxu1 %v1321_v40 }
 0x174   :  { %1262 = vmatprep.subr.bf16.mxu1 %v1322_v41 }
 0x177   :  { %1263 = vmatpush3.bf16.msra.mxu1 %v1322_v41 }
 0x22d   :  { %v1202_v48 = vpop.f32.mrb[0].mxu1 }
 0x22e   :  { %v435_v49 = vadd.f32 %v1202_v48, %v1698_v47  ;;  %v426_v50 = vpop.f32.mrb[1].mxu1 }
 0x22f   :  { %v427_v51 = vadd.f32 %v1698_v47, %v426_v50  ;;  %v1203_v52 = vpop.f32.mrb[2].mxu1 }
 0x230   :  { %v491_v53 = vmax.f32 %v435_v49, 0.0  ;;  %v438_v54 = vadd.f32 %v1203_v52, %v1698_v47  ;;  %v429_v55 = vpop.f32.mrb[3].mxu1 }
 0x231   :  { %v489_v56 = vmax.f32 %v427_v51, 0.0  ;;  %v430_v57 = vadd.f32 %v1698_v47, %v429_v55 }
 0x232   :  { %507 = vst [vmem:[#allocation11 + $0x10] sm:$0xff] %v491_v53  ;;  %v492_v58 = vmax.f32 %v438_v54, 0.0 }
 0x233   :  { %505 = vst [vmem:[#allocation11] sm:$0xff] %v489_v56  ;;  %v490_v59 = vmax.f32 %v430_v57, 0.0 }
 0x234   :  { %508 = vst [vmem:[#allocation11 + $0x18] sm:$0xff] %v492_v58  ;;  %v538_v60 = vpack.c.bf16 %v492_v58, %v491_v53 }
 0x235   :  { %506 = vst [vmem:[#allocation11 + $0x8] sm:$0xff] %v490_v59  ;;  %v537_v61 = vpack.c.bf16 %v490_v59, %v489_v56  ;;  %v1206_v62 = vpop.f32.mrb[4].mxu1 }
 0x236   :  { %v451_v63 = vadd.f32 %v1206_v62, %v1698_v47  ;;  %v442_v0 = vpop.f32.mrb[5].mxu1 }
 0x237   :  { %v443_v1 = vadd.f32 %v1698_v47, %v442_v0  ;;  %v1207_v2 = vpop.f32.mrb[6].mxu1  ;;  %1232 = vmatprep.mubr.bf16.mxu0 %v537_v61 }
 0x238   :  { %v495_v3 = vmax.f32 %v451_v63, 0.0  ;;  %v454_v4 = vadd.f32 %v1207_v2, %v1698_v47  ;;  %v445_v5 = vpop.f32.mrb[7].mxu1  ;;  %1233 = vmatmul.mubr.bf16.vlgmr.msra.gmra.mrb[16].mxu0 %v538_v60 }
 0x239   :  { %v493_v6 = vmax.f32 %v443_v1, 0.0  ;;  %v446_v7 = vadd.f32 %v1698_v47, %v445_v5 }
 0x23a   :  { %511 = vst [vmem:[#allocation11 + $0x30] sm:$0xff] %v495_v3  ;;  %v496_v8 = vmax.f32 %v454_v4, 0.0 }
 0x23b   :  { %509 = vst [vmem:[#allocation11 + $0x20] sm:$0xff] %v493_v6  ;;  %v494_v9 = vmax.f32 %v446_v7, 0.0 }
 0x23c   :  { %512 = vst [vmem:[#allocation11 + $0x38] sm:$0xff] %v496_v8  ;;  %v540_v10 = vpack.c.bf16 %v496_v8, %v495_v3 }
 0x23d   :  { %510 = vst [vmem:[#allocation11 + $0x28] sm:$0xff] %v494_v9  ;;  %v539_v11 = vpack.c.bf16 %v494_v9, %v493_v6  ;;  %v1210_v12 = vpop.f32.mrb[8].mxu1 }
 0x23e   :  { %v467_v13 = vadd.f32 %v1210_v12, %v1698_v47  ;;  %v458_v14 = vpop.f32.mrb[9].mxu1 }
 0x23f   :  { %v459_v15 = vadd.f32 %v1698_v47, %v458_v14  ;;  %v1211_v16 = vpop.f32.mrb[10].mxu1  ;;  %1236 = vmatprep.mubr.bf16.mxu0 %v539_v11 }
 0x240   :  { %v499_v17 = vmax.f32 %v467_v13, 0.0  ;;  %v470_v18 = vadd.f32 %v1211_v16, %v1698_v47  ;;  %v461_v19 = vpop.f32.mrb[11].mxu1  ;;  %1237 = vmatmul.mubr.bf16.gmra.mrb[20].mxu0 %v540_v10 }
 0x241   :  { %v497_v20 = vmax.f32 %v459_v15, 0.0  ;;  %v462_v21 = vadd.f32 %v1698_v47, %v461_v19 }
 0x242   :  { %515 = vst [vmem:[#allocation11 + $0x50] sm:$0xff] %v499_v17  ;;  %v500_v22 = vmax.f32 %v470_v18, 0.0 }
 0x243   :  { %513 = vst [vmem:[#allocation11 + $0x40] sm:$0xff] %v497_v20  ;;  %v498_v23 = vmax.f32 %v462_v21, 0.0 }
 0x244   :  { %516 = vst [vmem:[#allocation11 + $0x58] sm:$0xff] %v500_v22  ;;  %v542_v24 = vpack.c.bf16 %v500_v22, %v499_v17 }
 0x245   :  { %514 = vst [vmem:[#allocation11 + $0x48] sm:$0xff] %v498_v23  ;;  %v541_v25 = vpack.c.bf16 %v498_v23, %v497_v20  ;;  %v1214_v26 = vpop.f32.mrb[12].mxu1 }
 0x246   :  { %v483_v27 = vadd.f32 %v1214_v26, %v1698_v47  ;;  %v474_v28 = vpop.f32.mrb[13].mxu1 }
 0x247   :  { %v475_v29 = vadd.f32 %v1698_v47, %v474_v28  ;;  %v1215_v30 = vpop.f32.mrb[14].mxu1  ;;  %1240 = vmatprep.mubr.bf16.mxu0 %v541_v25 }
 0x248   :  { %v503_v31 = vmax.f32 %v483_v27, 0.0  ;;  %v486_v32 = vadd.f32 %v1215_v30, %v1698_v47  ;;  %v477_v33 = vpop.f32.mrb[15].mxu1  ;;  %1241 = vmatmul.mubr.bf16.gmra.mrb[24].mxu0 %v542_v24 }
 0x249   :  { %v501_v34 = vmax.f32 %v475_v29, 0.0  ;;  %v478_v35 = vadd.f32 %v1698_v47, %v477_v33 }
 0x24a   :  { %519 = vst [vmem:[#allocation11 + $0x70] sm:$0xff] %v503_v31  ;;  %v504_v36 = vmax.f32 %v486_v32, 0.0 }
 0x24b   :  { %517 = vst [vmem:[#allocation11 + $0x60] sm:$0xff] %v501_v34  ;;  %v502_v37 = vmax.f32 %v478_v35, 0.0 }
 0x24c   :  { %520 = vst [vmem:[#allocation11 + $0x78] sm:$0xff] %v504_v36  ;;  %v544_v38 = vpack.c.bf16 %v504_v36, %v503_v31 }
 0x24d   :  { %518 = vst [vmem:[#allocation11 + $0x68] sm:$0xff] %v502_v37  ;;  %v543_v39 = vpack.c.bf16 %v502_v37, %v501_v34 }
 0x24f   :  { %1244 = vmatprep.mubr.bf16.mxu0 %v543_v39 }
 0x250   :  { %1245 = vmatmul.mubr.bf16.gmra.mrb[28].mxu0 %v544_v38 }
 0x30b   :  { %v1234_v43 = vpop.f32.mrb[16].mxu0 }
 0x30c   :  { %v643_v44 = vadd.f32 %v1234_v43, %v1054_v42  ;;  %v634_v45 = vpop.f32.mrb[17].mxu0 }
 0x30d   :  { %v635_v46 = vadd.f32 %v1054_v42, %v634_v45  ;;  %v1235_v47 = vpop.f32.mrb[18].mxu0 }
 0x30e   :  { %v646_v48 = vadd.f32 %v1235_v47, %v1054_v42  ;;  %v637_v49 = vpop.f32.mrb[19].mxu0  ;;  %v699_v51 = vmax.f32 %v643_v44, 0.0 }
 0x30f   :  { %v638_v50 = vadd.f32 %v1054_v42, %v637_v49  ;;  %v697_v53 = vmax.f32 %v635_v46, 0.0 }
 0x310   :  { %v700_v52 = vmax.f32 %v646_v48, 0.0 }
 0x311   :  { %v698_v54 = vmax.f32 %v638_v50, 0.0 }
 0x312   :  { %v730_v55 = vpack.c.bf16 %v700_v52, %v699_v51 }
 0x313   :  { %v729_v56 = vpack.c.bf16 %v698_v54, %v697_v53  ;;  %v1238_v57 = vpop.f32.mrb[20].mxu0 }
 0x314   :  { %v659_v58 = vadd.f32 %v1238_v57, %v1054_v42  ;;  %v650_v59 = vpop.f32.mrb[21].mxu0 }
 0x315   :  { %v651_v60 = vadd.f32 %v1054_v42, %v650_v59  ;;  %v1239_v61 = vpop.f32.mrb[22].mxu0  ;;  %1264 = vmatprep.mubr.bf16.mxu1 %v729_v56 }
 0x316   :  { %v662_v62 = vadd.f32 %v1239_v61, %v1054_v42  ;;  %v653_v63 = vpop.f32.mrb[23].mxu0  ;;  %1265 = vmatmul.mubr.bf16.vlgmr.msra.gmra.mrb[16].mxu1 %v730_v55  ;;  %v703_v1 = vmax.f32 %v659_v58, 0.0 }
 0x317   :  { %v654_v0 = vadd.f32 %v1054_v42, %v653_v63  ;;  %v701_v3 = vmax.f32 %v651_v60, 0.0 }
 0x318   :  { %v704_v2 = vmax.f32 %v662_v62, 0.0 }
 0x319   :  { %v702_v4 = vmax.f32 %v654_v0, 0.0 }
 0x31a   :  { %v732_v5 = vpack.c.bf16 %v704_v2, %v703_v1 }
 0x31b   :  { %v731_v6 = vpack.c.bf16 %v702_v4, %v701_v3  ;;  %v1242_v7 = vpop.f32.mrb[24].mxu0 }
 0x31c   :  { %v675_v8 = vadd.f32 %v1242_v7, %v1054_v42  ;;  %v666_v9 = vpop.f32.mrb[25].mxu0 }
 0x31d   :  { %v667_v10 = vadd.f32 %v1054_v42, %v666_v9  ;;  %v1243_v11 = vpop.f32.mrb[26].mxu0  ;;  %1268 = vmatprep.mubr.bf16.mxu1 %v731_v6 }
 0x31e   :  { %v678_v12 = vadd.f32 %v1243_v11, %v1054_v42  ;;  %v669_v13 = vpop.f32.mrb[27].mxu0  ;;  %1269 = vmatmul.mubr.bf16.gmra.mrb[20].mxu1 %v732_v5  ;;  %v707_v15 = vmax.f32 %v675_v8, 0.0 }
 0x31f   :  { %v670_v14 = vadd.f32 %v1054_v42, %v669_v13  ;;  %v705_v17 = vmax.f32 %v667_v10, 0.0 }
 0x320   :  { %v708_v16 = vmax.f32 %v678_v12, 0.0 }
 0x321   :  { %v706_v18 = vmax.f32 %v670_v14, 0.0 }
 0x322   :  { %v734_v19 = vpack.c.bf16 %v708_v16, %v707_v15 }
 0x323   :  { %v733_v20 = vpack.c.bf16 %v706_v18, %v705_v17  ;;  %v1246_v21 = vpop.f32.mrb[28].mxu0 }
 0x324   :  { %v691_v22 = vadd.f32 %v1246_v21, %v1054_v42  ;;  %v682_v23 = vpop.f32.mrb[29].mxu0 }
 0x325   :  { %v683_v24 = vadd.f32 %v1054_v42, %v682_v23  ;;  %v1247_v25 = vpop.f32.mrb[30].mxu0  ;;  %1272 = vmatprep.mubr.bf16.mxu1 %v733_v20 }
 0x326   :  { %v694_v26 = vadd.f32 %v1247_v25, %v1054_v42  ;;  %v685_v27 = vpop.f32.mrb[31].mxu0  ;;  %1273 = vmatmul.mubr.bf16.gmra.mrb[24].mxu1 %v734_v19  ;;  %v711_v29 = vmax.f32 %v691_v22, 0.0 }
 0x327   :  { %v686_v28 = vadd.f32 %v1054_v42, %v685_v27  ;;  %v709_v31 = vmax.f32 %v683_v24, 0.0 }
 0x328   :  { %v712_v30 = vmax.f32 %v694_v26, 0.0 }
 0x329   :  { %v710_v32 = vmax.f32 %v686_v28, 0.0 }
 0x32a   :  { %v736_v33 = vpack.c.bf16 %v712_v30, %v711_v29 }
 0x32b   :  { %v735_v34 = vpack.c.bf16 %v710_v32, %v709_v31 }
 0x32d   :  { %1276 = vmatprep.mubr.bf16.mxu1 %v735_v34 }
 0x32e   :  { %1277 = vmatmul.mubr.bf16.gmra.mrb[28].mxu1 %v736_v33 }
 0x32f   :  { %1508 = shalt.err (!%p1505_p2)
}
 0x330   :  { %s1509_s22 = scalar_lea.hbm %s1779_s9, 2048 }
 0x331   :  { %p1510_p3 = scmp.ne.s32.totalorder %s1779_s9, %s1509_s22  ;;  %p1513_p4 = scmp.lt.u32.totalorder %s1509_s22, %s1779_s9 }
 0x333   :  { %p1515_p5 = pnand %p1513_p4, %p1510_p3 }
 0x335   :  { %1518 = shalt.err (!%p1515_p5)
}
 0x336   :  { %1012 = dma.vmem_to_hbm [thread:$0]  %s1007_s14, 2048, %s1779_s9, [#allocation4], %s1556_s5, %s1556_s5, %s1557_s28  }
 0x337   :  { %v1737_v35 = vld [vmem:[%s1778_s8] ss:$0 sm:$0xff]  ;;  %s1561_s8 = smov [#allocation12]  }
 0x338   :  { %s1018_s9 = sshll.u32 %s1561_s8, 4  ;;  %s1019_s9 = int_to_ptr.vmem [resolvable:$true] %s1018_s9 }
 0x339   :  { %s1519_s13 = scalar_lea.vmem %s1019_s9, 2048  ;;  %p1524_p7 = scmp.lt.s32.totalorder %s1019_s9, %s1019_s9 }
 0x33a   :  { %p1520_p6 = scmp.ne.s32.totalorder %s1019_s9, %s1519_s13  ;;  %p1525_p8 = scmp.lt.s32.totalorder %s1519_s13, %s1519_s13 }
 0x33c   :  { %p1526_p9 = por %p1525_p8, %p1524_p7 }
 0x33e   :  { %p1527_p10 = pnand %p1526_p9, %p1520_p6 }
 0x3e9   :  { %v1266_v36 = vpop.f32.mrb[16].mxu1 }
 0x3ea   :  { %v835_v37 = vadd.f32 %v1266_v36, %v1737_v35  ;;  %v826_v38 = vpop.f32.mrb[17].mxu1 }
 0x3eb   :  { %v827_v39 = vadd.f32 %v1737_v35, %v826_v38  ;;  %v1267_v40 = vpop.f32.mrb[18].mxu1 }
 0x3ec   :  { %v1074_v41 = vmul.f32 -1.442695, %v835_v37  ;;  %v838_v42 = vadd.f32 %v1267_v40, %v1737_v35  ;;  %v829_v43 = vpop.f32.mrb[19].mxu1 }
 0x3ed   :  { %v1072_v44 = vmul.f32 -1.442695, %v827_v39  ;;  %v830_v45 = vadd.f32 %v1737_v35, %v829_v43 }
 0x3ee   :  { %1323 = vpow2.f32 %v1074_v41  ;;  %v1075_v46 = vmul.f32 -1.442695, %v838_v42 }
 0x3ef   :  { %1325 = vpow2.f32 %v1072_v44  ;;  %v1073_v47 = vmul.f32 -1.442695, %v830_v45 }
 0x3f0   :  { %1327 = vpow2.f32 %v1075_v46 }
 0x3f1   :  { %1329 = vpow2.f32 %v1073_v47  ;;  %v1270_v48 = vpop.f32.mrb[20].mxu1 }
 0x3f2   :  { %v851_v49 = vadd.f32 %v1270_v48, %v1737_v35  ;;  %v842_v50 = vpop.f32.mrb[21].mxu1 }
 0x3f3   :  { %v843_v51 = vadd.f32 %v1737_v35, %v842_v50  ;;  %v1271_v52 = vpop.f32.mrb[22].mxu1 }
 0x3f4   :  { %v1078_v53 = vmul.f32 -1.442695, %v851_v49  ;;  %v854_v54 = vadd.f32 %v1271_v52, %v1737_v35  ;;  %v845_v55 = vpop.f32.mrb[23].mxu1 }
 0x3f5   :  { %v1076_v56 = vmul.f32 -1.442695, %v843_v51  ;;  %v846_v57 = vadd.f32 %v1737_v35, %v845_v55 }
 0x3f6   :  { %1331 = vpow2.f32 %v1078_v53  ;;  %v1079_v58 = vmul.f32 -1.442695, %v854_v54 }
 0x3f7   :  { %1333 = vpow2.f32 %v1076_v56  ;;  %v1077_v59 = vmul.f32 -1.442695, %v846_v57 }
 0x3f8   :  { %v1324_v60 = vpop.eup %1323  ;;  %1335 = vpow2.f32 %v1079_v58 }
 0x3f9   :  { %v1326_v61 = vpop.eup %1325  ;;  %v939_v62 = vadd.f32 1.0, %v1324_v60  ;;  %1337 = vpow2.f32 %v1077_v59  ;;  %v1274_v63 = vpop.f32.mrb[24].mxu1 }
 0x3fa   :  { %v1328_v0 = vpop.eup %1327  ;;  %v937_v1 = vadd.f32 1.0, %v1326_v61  ;;  %v867_v2 = vadd.f32 %v1274_v63, %v1737_v35  ;;  %v858_v3 = vpop.f32.mrb[25].mxu1 }
 0x3fb   :  { %v1330_v4 = vpop.eup %1329  ;;  %1339 = vrcp.f32 %v939_v62  ;;  %v940_v5 = vadd.f32 1.0, %v1328_v0  ;;  %v859_v6 = vadd.f32 %v1737_v35, %v858_v3  ;;  %v1275_v7 = vpop.f32.mrb[26].mxu1 }
 0x3fc   :  { %1341 = vrcp.f32 %v937_v1  ;;  %v938_v8 = vadd.f32 1.0, %v1330_v4  ;;  %v1082_v9 = vmul.f32 -1.442695, %v867_v2  ;;  %v870_v10 = vadd.f32 %v1275_v7, %v1737_v35  ;;  %v861_v11 = vpop.f32.mrb[27].mxu1 }
 0x3fd   :  { %1343 = vrcp.f32 %v940_v5  ;;  %v1080_v12 = vmul.f32 -1.442695, %v859_v6  ;;  %v862_v13 = vadd.f32 %v1737_v35, %v861_v11 }
 0x3fe   :  { %1345 = vrcp.f32 %v938_v8  ;;  %v1083_v14 = vmul.f32 -1.442695, %v870_v10 }
 0x3ff   :  { %1347 = vpow2.f32 %v1082_v9  ;;  %v1081_v15 = vmul.f32 -1.442695, %v862_v13 }
 0x400   :  { %v1332_v16 = vpop.eup %1331  ;;  %1349 = vpow2.f32 %v1080_v12 }
 0x401   :  { %v1334_v17 = vpop.eup %1333  ;;  %v943_v18 = vadd.f32 1.0, %v1332_v16  ;;  %1351 = vpow2.f32 %v1083_v14  ;;  %v1278_v19 = vpop.f32.mrb[28].mxu1 }
 0x402   :  { %v1336_v20 = vpop.eup %1335  ;;  %v941_v21 = vadd.f32 1.0, %v1334_v17  ;;  %1353 = vpow2.f32 %v1081_v15  ;;  %v883_v22 = vadd.f32 %v1278_v19, %v1737_v35  ;;  %v874_v23 = vpop.f32.mrb[29].mxu1 }
 0x403   :  { %v1338_v24 = vpop.eup %1337  ;;  %1355 = vrcp.f32 %v943_v18  ;;  %v944_v25 = vadd.f32 1.0, %v1336_v20  ;;  %v875_v26 = vadd.f32 %v1737_v35, %v874_v23  ;;  %v1279_v27 = vpop.f32.mrb[30].mxu1 }
 0x404   :  { %1357 = vrcp.f32 %v941_v21  ;;  %v942_v28 = vadd.f32 1.0, %v1338_v24  ;;  %v1086_v29 = vmul.f32 -1.442695, %v883_v22  ;;  %v886_v30 = vadd.f32 %v1279_v27, %v1737_v35  ;;  %v877_v31 = vpop.f32.mrb[31].mxu1 }
 0x405   :  { %v1340_v32 = vpop.eup %1339  ;;  %1359 = vrcp.f32 %v944_v25  ;;  %v1084_v33 = vmul.f32 -1.442695, %v875_v26  ;;  %v878_v34 = vadd.f32 %v1737_v35, %v877_v31 }
 0x406   :  { %v1342_v36 = vpop.eup %1341  ;;  %987 = vst [vmem:[#allocation12 + $0x10] sm:$0xff] %v1340_v32  ;;  %1361 = vrcp.f32 %v942_v28  ;;  %v1087_v37 = vmul.f32 -1.442695, %v886_v30 }
 0x407   :  { %v1344_v38 = vpop.eup %1343  ;;  %985 = vst [vmem:[#allocation12] sm:$0xff] %v1342_v36  ;;  %1363 = vpow2.f32 %v1086_v29  ;;  %v1085_v39 = vmul.f32 -1.442695, %v878_v34 }
 0x408   :  { %v1346_v40 = vpop.eup %1345  ;;  %988 = vst [vmem:[#allocation12 + $0x18] sm:$0xff] %v1344_v38  ;;  %1365 = vpow2.f32 %v1084_v33 }
 0x409   :  { %v1348_v41 = vpop.eup %1347  ;;  %986 = vst [vmem:[#allocation12 + $0x8] sm:$0xff] %v1346_v40  ;;  %1367 = vpow2.f32 %v1087_v37 }
 0x40a   :  { %v1350_v42 = vpop.eup %1349  ;;  %v947_v43 = vadd.f32 1.0, %v1348_v41  ;;  %1369 = vpow2.f32 %v1085_v39 }
 0x40b   :  { %v1352_v44 = vpop.eup %1351  ;;  %v945_v45 = vadd.f32 1.0, %v1350_v42 }
 0x40c   :  { %v1354_v35 = vpop.eup %1353  ;;  %1371 = vrcp.f32 %v947_v43  ;;  %v948_v46 = vadd.f32 1.0, %v1352_v44 }
 0x40d   :  { %v1356_v47 = vpop.eup %1355  ;;  %1373 = vrcp.f32 %v945_v45  ;;  %v946_v48 = vadd.f32 1.0, %v1354_v35 }
 0x40e   :  { %v1358_v49 = vpop.eup %1357  ;;  %991 = vst [vmem:[#allocation12 + $0x30] sm:$0xff] %v1356_v47  ;;  %1375 = vrcp.f32 %v948_v46 }
 0x40f   :  { %v1360_v50 = vpop.eup %1359  ;;  %989 = vst [vmem:[#allocation12 + $0x20] sm:$0xff] %v1358_v49  ;;  %1377 = vrcp.f32 %v946_v48 }
 0x410   :  { %v1362_v51 = vpop.eup %1361  ;;  %992 = vst [vmem:[#allocation12 + $0x38] sm:$0xff] %v1360_v50 }
 0x411   :  { %v1364_v52 = vpop.eup %1363  ;;  %990 = vst [vmem:[#allocation12 + $0x28] sm:$0xff] %v1362_v51 }
 0x412   :  { %v1366_v53 = vpop.eup %1365  ;;  %v951_v54 = vadd.f32 1.0, %v1364_v52 }
 0x413   :  { %v1368_v55 = vpop.eup %1367  ;;  %v949_v56 = vadd.f32 1.0, %v1366_v53 }
 0x414   :  { %v1370_v57 = vpop.eup %1369  ;;  %1379 = vrcp.f32 %v951_v54  ;;  %v952_v58 = vadd.f32 1.0, %v1368_v55 }
 0x415   :  { %1381 = vrcp.f32 %v949_v56  ;;  %v950_v59 = vadd.f32 1.0, %v1370_v57 }
 0x416   :  { %v1372_v60 = vpop.eup %1371  ;;  %1383 = vrcp.f32 %v952_v58 }
 0x417   :  { %v1374_v61 = vpop.eup %1373  ;;  %995 = vst [vmem:[#allocation12 + $0x50] sm:$0xff] %v1372_v60  ;;  %1385 = vrcp.f32 %v950_v59 }
 0x418   :  { %v1376_v62 = vpop.eup %1375  ;;  %993 = vst [vmem:[#allocation12 + $0x40] sm:$0xff] %v1374_v61 }
 0x419   :  { %v1378_v63 = vpop.eup %1377  ;;  %996 = vst [vmem:[#allocation12 + $0x58] sm:$0xff] %v1376_v62 }
 0x41a   :  { %994 = vst [vmem:[#allocation12 + $0x48] sm:$0xff] %v1378_v63 }
 0x41e   :  { %v1380_v0 = vpop.eup %1379 }
 0x41f   :  { %v1382_v1 = vpop.eup %1381  ;;  %999 = vst [vmem:[#allocation12 + $0x70] sm:$0xff] %v1380_v0 }
 0x420   :  { %v1384_v2 = vpop.eup %1383  ;;  %997 = vst [vmem:[#allocation12 + $0x60] sm:$0xff] %v1382_v1 }
 0x421   :  { %v1386_v3 = vpop.eup %1385  ;;  %1000 = vst [vmem:[#allocation12 + $0x78] sm:$0xff] %v1384_v2 }
 0x422   :  { %998 = vst [vmem:[#allocation12 + $0x68] sm:$0xff] %v1386_v3 }
 0x423   :  { %1530 = shalt.err (!%p1527_p10)
}
 0x424   :  { %s1531_s1 = scalar_lea.hbm %s1780_s10, 2048 }
 0x425   :  { %p1532_p11 = scmp.ne.s32.totalorder %s1780_s10, %s1531_s1  ;;  %p1535_p12 = scmp.lt.u32.totalorder %s1531_s1, %s1780_s10 }
 0x427   :  { %p1537_p13 = pnand %p1535_p12, %p1532_p11 }
 0x429   :  { %1540 = shalt.err (!%p1537_p13)
}
 0x42a   :  { %1024 = dma.vmem_to_hbm [thread:$0]  %s1019_s9, 2048, %s1780_s10, [#allocation13], %s1556_s5, %s1556_s5, %s1557_s28  }
 0x42b   :  { %1547 = dma.done.wait [#allocation4], 2048  }
 0x42c   :  { %1548 = vsyncadd [#allocation4], 4294965248 }
 0x42d   :  { %1549 = dma.done.wait [#allocation13], 2048  }
 0x42e   :  { %1550 = vsyncadd [#allocation13], 4294965248 }
 0x42f   :  { %1031 = vsyncpa [#allocation3], 1 }
 0x430   :  { %1032 = vsyncpa [#allocation6], 1 }
 0x431   :  { %1033 = vsyncpa [#allocation9], 1 }
 0x432   :  { %1034 = vsyncpa [#allocation4], 1 }
 0x433   :  { %1035 = vsyncpa [#allocation13], 1 }

// kernel: tpu_custom_call.1
= control target key start
LH: loop header
LB: loop body
LE: loop exit
PB: predicated region body
PF: predicated region fallthrough
CT: control target
= control target key end

     0   :  { %16 = vsyncpa [#allocation3], 0  ;;  %s1770_s0 = inlined_call_operand.hbm [shape: f32[128,128], index: 0, kind: input, shape index: {}]   ;;  %s1771_s1 = inlined_call_operand.hbm [shape: bf16[128,128], index: 1, kind: input, shape index: {}]   ;;  %s1772_s2 = inlined_call_operand.vmem [shape: f32[1,128], index: 2, kind: input, shape index: {}]   ;;  %s1773_s3 = inlined_call_operand.hbm [shape: bf16[128,128], index: 3, kind: input, shape index: {}]   ;;  %s1774_s4 = inlined_call_operand.vmem [shape: f32[1,128], index: 4, kind: input, shape index: {}]   ;;  %s1775_s5 = inlined_call_operand.hbm [shape: bf16[128,128], index: 5, kind: input, shape index: {}]   ;;  %s1776_s6 = inlined_call_operand.vmem [shape: f32[1,128], index: 6, kind: input, shape index: {}]   ;;  %s1777_s7 = inlined_call_operand.hbm [shape: bf16[128,128], index: 7, kind: input, shape index: {}]   ;;  %s1778_s8 = inlined_call_operand.vmem [shape: f32[1,128], index: 8, kind: input, shape index: {}]   ;;  %s1779_s9 = inlined_call_operand.hbm [shape: f32[128,128], index: 9, kind: output, shape index: {0}]   ;;  %s1780_s10 = inlined_call_operand.hbm [shape: f32[128,128], index: 10, kind: output, shape index: {1}]  }
   0x1   :  { %17 = vsyncpa [#allocation6], 0 }
   0x2   :  { %18 = vsyncpa [#allocation9], 0 }
   0x3   :  { %19 = vsyncpa [#allocation4], 0 }
   0x4   :  { %20 = vsyncpa [#allocation13], 0  ;;  %s1551_s13 = smov [#allocation5]   ;;  %s1387_s17 = scalar_lea.hbm %s1771_s1, 1024 }
   0x5   :  { %s38_s14 = sshll.u32 %s1551_s13, 4  ;;  %p1388_p0 = scmp.ne.s32.totalorder %s1771_s1, %s1387_s17  ;;  %s39_s14 = int_to_ptr.vmem [resolvable:$true] %s38_s14 }
   0x6   :  { %p1391_p1 = scmp.lt.u32.totalorder %s1387_s17, %s1771_s1 }
   0x8   :  { %p1393_p2 = pnand %p1391_p1, %p1388_p0 }
   0xa   :  { %1396 = shalt.err (!%p1393_p2)
}
   0xb   :  { %s1397_s22 = scalar_lea.vmem %s39_s14, 1024  ;;  %p1402_p4 = scmp.lt.s32.totalorder %s39_s14, %s39_s14 }
   0xc   :  { %p1398_p3 = scmp.ne.s32.totalorder %s39_s14, %s1397_s22  ;;  %p1403_p5 = scmp.lt.s32.totalorder %s1397_s22, %s1397_s22 }
   0xe   :  { %p1404_p6 = por %p1403_p5, %p1402_p4 }
  0x10   :  { %p1405_p7 = pnand %p1404_p6, %p1398_p3 }
  0x12   :  { %1408 = shalt.err (!%p1405_p7)
}
  0x13   :  { %s1552_s23 = smov 64   ;;  %s1553_s24 = smov 4  }
  0x14   :  { %44 = dma.hbm_to_vmem [thread:$0]  %s1771_s1, 1024, %s39_s14, [#allocation6], %s1552_s23, %s1552_s23, %s1553_s24  }
  0x15   :  { %s1554_s27 = smov [#allocation8]   ;;  %s1555_s29 = smov [#allocation2]  }
  0x16   :  { %s66_s28 = sshll.u32 %s1554_s27, 4  ;;  %s26_s30 = sshll.u32 %s1555_s29, 4  ;;  %s67_s28 = int_to_ptr.vmem [resolvable:$true] %s66_s28  ;;  %s27_s30 = int_to_ptr.vmem [resolvable:$true] %s26_s30 }
  0x17   :  { %s1409_s13 = scalar_lea.hbm %s1775_s5, 1024 }
  0x18   :  { %p1410_p8 = scmp.ne.s32.totalorder %s1775_s5, %s1409_s13  ;;  %p1413_p9 = scmp.lt.u32.totalorder %s1409_s13, %s1775_s5 }
  0x1a   :  { %p1415_p10 = pnand %p1413_p9, %p1410_p8 }
  0x1c   :  { %1418 = shalt.err (!%p1415_p10)
}
  0x1d   :  { %s1419_s1 = scalar_lea.vmem %s67_s28, 1024  ;;  %p1424_p12 = scmp.lt.s32.totalorder %s67_s28, %s67_s28 }
  0x1e   :  { %p1420_p11 = scmp.ne.s32.totalorder %s67_s28, %s1419_s1  ;;  %p1425_p13 = scmp.lt.s32.totalorder %s1419_s1, %s1419_s1 }
  0x20   :  { %p1426_p0 = por %p1425_p13, %p1424_p12 }
  0x22   :  { %p1427_p1 = pnand %p1426_p0, %p1420_p11 }
  0x24   :  { %1430 = shalt.err (!%p1427_p1)
}
  0x25   :  { %72 = dma.hbm_to_vmem [thread:$0]  %s1775_s5, 1024, %s67_s28, [#allocation9], %s1552_s23, %s1552_s23, %s1553_s24  }
  0x26   :  { %s1431_s22 = scalar_lea.hbm %s1770_s0, 2048 }
  0x27   :  { %p1432_p2 = scmp.ne.s32.totalorder %s1770_s0, %s1431_s22  ;;  %p1435_p3 = scmp.lt.u32.totalorder %s1431_s22, %s1770_s0 }
  0x29   :  { %p1437_p4 = pnand %p1435_p3, %p1432_p2 }
  0x2b   :  { %1440 = shalt.err (!%p1437_p4)
}
  0x2c   :  { %s1441_s11 = scalar_lea.vmem %s27_s30, 2048  ;;  %p1446_p6 = scmp.lt.s32.totalorder %s27_s30, %s27_s30 }
  0x2d   :  { %p1442_p5 = scmp.ne.s32.totalorder %s27_s30, %s1441_s11  ;;  %p1447_p7 = scmp.lt.s32.totalorder %s1441_s11, %s1441_s11 }
  0x2f   :  { %p1448_p8 = por %p1447_p7, %p1446_p6 }
  0x31   :  { %p1449_p9 = pnand %p1448_p8, %p1442_p5 }
  0x33   :  { %1452 = shalt.err (!%p1449_p9)
}
  0x34   :  { %s1556_s5 = smov 128   ;;  %s1557_s28 = smov 8  }
  0x35   :  { %32 = dma.hbm_to_vmem [thread:$0]  %s1770_s0, 2048, %s27_s30, [#allocation3], %s1556_s5, %s1556_s5, %s1557_s28  }
  0x36   :  { %s1558_s15 = smov [#allocation7]   ;;  %s1559_s17 = smov [#allocation10]  }
  0x37   :  { %s52_s16 = sshll.u32 %s1558_s15, 4  ;;  %s80_s18 = sshll.u32 %s1559_s17, 4  ;;  %s53_s16 = int_to_ptr.vmem [resolvable:$true] %s52_s16  ;;  %s81_s18 = int_to_ptr.vmem [resolvable:$true] %s80_s18 }
  0x38   :  { %s1453_s19 = scalar_lea.hbm %s1773_s3, 1024 }
  0x39   :  { %p1454_p10 = scmp.ne.s32.totalorder %s1773_s3, %s1453_s19  ;;  %p1457_p11 = scmp.lt.u32.totalorder %s1453_s19, %s1773_s3 }
  0x3b   :  { %p1459_p12 = pnand %p1457_p11, %p1454_p10 }
  0x3d   :  { %1462 = shalt.err (!%p1459_p12)
}
  0x3e   :  { %s1463_s0 = scalar_lea.vmem %s53_s16, 1024  ;;  %p1468_p0 = scmp.lt.s32.totalorder %s53_s16, %s53_s16 }
  0x3f   :  { %p1464_p13 = scmp.ne.s32.totalorder %s53_s16, %s1463_s0  ;;  %p1469_p1 = scmp.lt.s32.totalorder %s1463_s0, %s1463_s0 }
  0x41   :  { %p1470_p2 = por %p1469_p1, %p1468_p0 }
  0x43   :  { %p1471_p3 = pnand %p1470_p2, %p1464_p13 }
  0x45   :  { %1474 = shalt.err (!%p1471_p3)
}
  0x46   :  { %58 = dma.hbm_to_vmem [thread:$0]  %s1773_s3, 1024, %s53_s16, [#allocation6], %s1552_s23, %s1552_s23, %s1553_s24  }
  0x47   :  { %s1475_s11 = scalar_lea.hbm %s1777_s7, 1024 }
  0x48   :  { %p1476_p4 = scmp.ne.s32.totalorder %s1777_s7, %s1475_s11  ;;  %p1479_p5 = scmp.lt.u32.totalorder %s1475_s11, %s1777_s7 }
  0x4a   :  { %p1481_p6 = pnand %p1479_p5, %p1476_p4 }
  0x4c   :  { %1484 = shalt.err (!%p1481_p6)
}
  0x4d   :  { %s1485_s1 = scalar_lea.vmem %s81_s18, 1024  ;;  %p1490_p8 = scmp.lt.s32.totalorder %s81_s18, %s81_s18 }
  0x4e   :  { %p1486_p7 = scmp.ne.s32.totalorder %s81_s18, %s1485_s1  ;;  %p1491_p9 = scmp.lt.s32.totalorder %s1485_s1, %s1485_s1 }
  0x50   :  { %p1492_p10 = por %p1491_p9, %p1490_p8 }
  0x52   :  { %p1493_p11 = pnand %p1492_p10, %p1486_p7 }
  0x54   :  { %1496 = shalt.err (!%p1493_p11)
}
  0x55   :  { %86 = dma.hbm_to_vmem [thread:$0]  %s1777_s7, 1024, %s81_s18, [#allocation9], %s1552_s23, %s1552_s23, %s1553_s24  }
  0x56   :  { %1541 = dma.done.wait [#allocation3], 2048  }
  0x57   :  { %1542 = vsyncadd [#allocation3], 4294965248 }
  0x58   :  { %1543 = dma.done.wait [#allocation6], 2048  }
  0x59   :  { %1544 = vsyncadd [#allocation6], 4294965248 }
  0x5a   :  { %1545 = dma.done.wait [#allocation9], 2048  }
  0x5b   :  { %1546 = vsyncadd [#allocation9], 4294965248  ;;  %v1291_v0 = vld [vmem:[#allocation5] sm:$0xff]   ;;  %v1292_v1 = vld [vmem:[#allocation5 + $0x8] sm:$0xff]  }
  0x5c   :  { %1152 = vmatprep.subr.bf16.mxu0 %v1291_v0  ;;  %v1293_v2 = vld [vmem:[#allocation5 + $0x10] sm:$0xff]   ;;  %v1294_v3 = vld [vmem:[#allocation5 + $0x18] sm:$0xff]   ;;  %v105_v4 = vld [vmem:[#allocation2] sm:$0xff] }
  0x5d   :  { %1153 = vmatpush3.bf16.msra.mxu0 %v1291_v0  ;;  %v106_v5 = vld [vmem:[#allocation2 + $0x8] sm:$0xff]  ;;  %v1295_v7 = vld [vmem:[#allocation5 + $0x20] sm:$0xff]   ;;  %v1301_v11 = vld [vmem:[#allocation7 + $0x10] sm:$0xff]  }
  0x5e   :  { %1154 = vmatprep.subr.bf16.mxu0 %v1292_v1  ;;  %v137_v6 = vpack.c.bf16 %v106_v5, %v105_v4  ;;  %v1299_v8 = vld [vmem:[#allocation7] sm:$0xff]   ;;  %v1300_v9 = vld [vmem:[#allocation7 + $0x8] sm:$0xff]   ;;  %v1297_v12 = vld [vmem:[#allocation5 + $0x30] sm:$0xff]  }
  0x5f   :  { %v1296_v10 = vld [vmem:[#allocation5 + $0x28] sm:$0xff]   ;;  %1184 = vmatprep.subr.bf16.mxu1 %v1299_v8  ;;  %v1302_v13 = vld [vmem:[#allocation7 + $0x18] sm:$0xff]   ;;  %v1303_v15 = vld [vmem:[#allocation7 + $0x20] sm:$0xff]  }
  0x60   :  { %1168 = vmatprep.mubr.bf16.mxu0 %v137_v6  ;;  %1185 = vmatpush3.bf16.msra.mxu1 %v1299_v8  ;;  %v1298_v14 = vld [vmem:[#allocation5 + $0x38] sm:$0xff]   ;;  %v107_v16 = vld [vmem:[#allocation2 + $0x10] sm:$0xff]  ;;  %v109_v18 = vld [vmem:[#allocation2 + $0x20] sm:$0xff] }
  0x61   :  { %1155 = vmatpush3.bf16.msra.mxu0 %v1292_v1  ;;  %1186 = vmatprep.subr.bf16.mxu1 %v1300_v9  ;;  %v108_v17 = vld [vmem:[#allocation2 + $0x18] sm:$0xff]  ;;  %v110_v19 = vld [vmem:[#allocation2 + $0x28] sm:$0xff]  ;;  %v111_v23 = vld [vmem:[#allocation2 + $0x30] sm:$0xff] }
  0x62   :  { %1156 = vmatprep.subr.bf16.mxu0 %v1293_v2  ;;  %v1304_v20 = vld [vmem:[#allocation7 + $0x28] sm:$0xff]   ;;  %v138_v21 = vpack.c.bf16 %v108_v17, %v107_v16  ;;  %v139_v22 = vpack.c.bf16 %v110_v19, %v109_v18  ;;  %v112_v24 = vld [vmem:[#allocation2 + $0x38] sm:$0xff]  ;;  %v113_v25 = vld [vmem:[#allocation2 + $0x40] sm:$0xff] }
  0x63   :  { %v114_v26 = vld [vmem:[#allocation2 + $0x48] sm:$0xff]  ;;  %v140_v27 = vpack.c.bf16 %v112_v24, %v111_v23  ;;  %v115_v29 = vld [vmem:[#allocation2 + $0x50] sm:$0xff]  ;;  %v116_v30 = vld [vmem:[#allocation2 + $0x58] sm:$0xff] }
  0x64   :  { %1187 = vmatpush3.bf16.msra.mxu1 %v1300_v9  ;;  %v141_v28 = vpack.c.bf16 %v114_v26, %v113_v25  ;;  %v117_v31 = vld [vmem:[#allocation2 + $0x60] sm:$0xff]  ;;  %v118_v32 = vld [vmem:[#allocation2 + $0x68] sm:$0xff]  ;;  %v142_v33 = vpack.c.bf16 %v116_v30, %v115_v29  ;;  %v119_v35 = vld [vmem:[#allocation2 + $0x70] sm:$0xff] }
  0x65   :  { %1157 = vmatpush3.bf16.msra.mxu0 %v1293_v2  ;;  %1188 = vmatprep.subr.bf16.mxu1 %v1301_v11  ;;  %v143_v34 = vpack.c.bf16 %v118_v32, %v117_v31  ;;  %v120_v36 = vld [vmem:[#allocation2 + $0x78] sm:$0xff]  ;;  %v1305_v38 = vld [vmem:[#allocation7 + $0x30] sm:$0xff]   ;;  %v1307_v40 = vld [vmem:[#allocation8] sm:$0xff]  }
  0x66   :  { %1158 = vmatprep.subr.bf16.mxu0 %v1294_v3  ;;  %v144_v37 = vpack.c.bf16 %v120_v36, %v119_v35  ;;  %v1306_v39 = vld [vmem:[#allocation7 + $0x38] sm:$0xff]   ;;  %v1308_v41 = vld [vmem:[#allocation8 + $0x8] sm:$0xff]   ;;  %v1309_v42 = vld [vmem:[#allocation8 + $0x10] sm:$0xff]  }
  0x67   :  { %v1310_v43 = vld [vmem:[#allocation8 + $0x18] sm:$0xff]   ;;  %v1311_v44 = vld [vmem:[#allocation8 + $0x20] sm:$0xff]   ;;  %v1312_v45 = vld [vmem:[#allocation8 + $0x28] sm:$0xff]  }
  0x68   :  { %1189 = vmatpush3.bf16.msra.mxu1 %v1301_v11  ;;  %v1036_v46 = vld [vmem:[%s1772_s2] ss:$0 sm:$0xff] }
  0x69   :  { %1159 = vmatpush3.bf16.msra.mxu0 %v1294_v3  ;;  %1190 = vmatprep.subr.bf16.mxu1 %v1302_v13 }
  0x6a   :  { %1160 = vmatprep.subr.bf16.mxu0 %v1295_v7 }
  0x6c   :  { %1191 = vmatpush3.bf16.msra.mxu1 %v1302_v13 }
  0x6d   :  { %1161 = vmatpush3.bf16.msra.mxu0 %v1295_v7  ;;  %1192 = vmatprep.subr.bf16.mxu1 %v1303_v15 }
  0x6e   :  { %1162 = vmatprep.subr.bf16.mxu0 %v1296_v10 }
  0x70   :  { %1193 = vmatpush3.bf16.msra.mxu1 %v1303_v15 }
  0x71   :  { %1163 = vmatpush3.bf16.msra.mxu0 %v1296_v10  ;;  %1194 = vmatprep.subr.bf16.mxu1 %v1304_v20 }
  0x72   :  { %1164 = vmatprep.subr.bf16.mxu0 %v1297_v12 }
  0x74   :  { %1195 = vmatpush3.bf16.msra.mxu1 %v1304_v20 }
  0x75   :  { %1165 = vmatpush3.bf16.msra.mxu0 %v1297_v12  ;;  %1196 = vmatprep.subr.bf16.mxu1 %v1305_v38 }
  0x76   :  { %1166 = vmatprep.subr.bf16.mxu0 %v1298_v14 }
  0x78   :  { %1197 = vmatpush3.bf16.msra.mxu1 %v1305_v38 }
  0x79   :  { %1167 = vmatpush3.bf16.msra.mxu0 %v1298_v14  ;;  %1198 = vmatprep.subr.bf16.mxu1 %v1306_v39 }
  0x7a   :  { %1216 = vmatprep.subr.bf16.mxu0 %v1307_v40 }
  0x7c   :  { %1169 = vmatmul.mubr.bf16.vlgmr.msra.gmra.mrb[0].mxu0 %v138_v21  ;;  %1199 = vmatpush3.bf16.msra.mxu1 %v1306_v39  ;;  %v1313_v39 = vld [vmem:[#allocation8 + $0x30] sm:$0xff]  }
  0x7d   :  { %1172 = vmatprep.mubr.bf16.mxu0 %v139_v22  ;;  %1217 = vmatpush3.bf16.msra.mxu0 %v1307_v40  ;;  %v1314_v40 = vld [vmem:[#allocation8 + $0x38] sm:$0xff]  }
  0x7e   :  { %1218 = vmatprep.subr.bf16.mxu0 %v1308_v41 }
  0x81   :  { %1219 = vmatpush3.bf16.msra.mxu0 %v1308_v41  ;;  %v1315_v41 = vld [vmem:[#allocation10] sm:$0xff]  }
  0x82   :  { %1220 = vmatprep.subr.bf16.mxu0 %v1309_v42  ;;  %1248 = vmatprep.subr.bf16.mxu1 %v1315_v41 }
  0x84   :  { %1173 = vmatmul.mubr.bf16.gmra.mrb[4].mxu0 %v140_v27 }
  0x85   :  { %1176 = vmatprep.mubr.bf16.mxu0 %v141_v28  ;;  %1221 = vmatpush3.bf16.msra.mxu0 %v1309_v42  ;;  %v1316_v42 = vld [vmem:[#allocation10 + $0x8] sm:$0xff]  }
  0x86   :  { %1222 = vmatprep.subr.bf16.mxu0 %v1310_v43 }
  0x89   :  { %1223 = vmatpush3.bf16.msra.mxu0 %v1310_v43  ;;  %v1317_v43 = vld [vmem:[#allocation10 + $0x10] sm:$0xff]  }
  0x8a   :  { %1224 = vmatprep.subr.bf16.mxu0 %v1311_v44 }
  0x8c   :  { %1177 = vmatmul.mubr.bf16.gmra.mrb[8].mxu0 %v142_v33 }
  0x8d   :  { %1180 = vmatprep.mubr.bf16.mxu0 %v143_v34  ;;  %1225 = vmatpush3.bf16.msra.mxu0 %v1311_v44  ;;  %v1318_v44 = vld [vmem:[#allocation10 + $0x18] sm:$0xff]  }
  0x8e   :  { %1226 = vmatprep.subr.bf16.mxu0 %v1312_v45 }
  0x91   :  { %1227 = vmatpush3.bf16.msra.mxu0 %v1312_v45  ;;  %v1319_v45 = vld [vmem:[#allocation10 + $0x20] sm:$0xff]  }
  0x92   :  { %1228 = vmatprep.subr.bf16.mxu0 %v1313_v39 }
  0x94   :  { %1181 = vmatmul.mubr.bf16.gmra.mrb[12].mxu0 %v144_v37 }
  0x95   :  { %1229 = vmatpush3.bf16.msra.mxu0 %v1313_v39 }
  0x96   :  { %1230 = vmatprep.subr.bf16.mxu0 %v1314_v40 }
  0x99   :  { %1231 = vmatpush3.bf16.msra.mxu0 %v1314_v40  ;;  %v1321_v40 = vld [vmem:[#allocation10 + $0x30] sm:$0xff]  }
 0x14f   :  { %v1170_v47 = vpop.f32.mrb[0].mxu0 }
 0x150   :  { %v243_v48 = vadd.f32 %v1170_v47, %v1036_v46  ;;  %v234_v49 = vpop.f32.mrb[1].mxu0  ;;  %v1698_v47 = vld [vmem:[%s1774_s4] ss:$0 sm:$0xff] }
 0x151   :  { %v235_v50 = vadd.f32 %v1036_v46, %v234_v49  ;;  %v1171_v51 = vpop.f32.mrb[2].mxu0 }
 0x152   :  { %v246_v52 = vadd.f32 %v1171_v51, %v1036_v46  ;;  %v237_v53 = vpop.f32.mrb[3].mxu0  ;;  %v299_v55 = vmax.f32 %v243_v48, 0.0 }
 0x153   :  { %v238_v54 = vadd.f32 %v1036_v46, %v237_v53  ;;  %v297_v57 = vmax.f32 %v235_v50, 0.0 }
 0x154   :  { %v300_v56 = vmax.f32 %v246_v52, 0.0 }
 0x155   :  { %v298_v58 = vmax.f32 %v238_v54, 0.0 }
 0x156   :  { %v330_v59 = vpack.c.bf16 %v300_v56, %v299_v55 }
 0x157   :  { %v1174_v60 = vpop.f32.mrb[4].mxu0  ;;  %v329_v61 = vpack.c.bf16 %v298_v58, %v297_v57 }
 0x158   :  { %v259_v62 = vadd.f32 %v1174_v60, %v1036_v46  ;;  %v250_v63 = vpop.f32.mrb[5].mxu0 }
 0x159   :  { %v251_v0 = vadd.f32 %v1036_v46, %v250_v63  ;;  %v1175_v1 = vpop.f32.mrb[6].mxu0  ;;  %1200 = vmatprep.mubr.bf16.mxu1 %v329_v61 }
 0x15a   :  { %v262_v2 = vadd.f32 %v1175_v1, %v1036_v46  ;;  %v253_v3 = vpop.f32.mrb[7].mxu0  ;;  %1201 = vmatmul.mubr.bf16.vlgmr.msra.gmra.mrb[0].mxu1 %v330_v59  ;;  %v303_v5 = vmax.f32 %v259_v62, 0.0 }
 0x15b   :  { %v254_v4 = vadd.f32 %v1036_v46, %v253_v3  ;;  %v301_v7 = vmax.f32 %v251_v0, 0.0  ;;  %1249 = vmatpush3.bf16.msra.mxu1 %v1315_v41  ;;  %v1322_v41 = vld [vmem:[#allocation10 + $0x38] sm:$0xff]  }
 0x15c   :  { %v304_v6 = vmax.f32 %v262_v2, 0.0  ;;  %1250 = vmatprep.subr.bf16.mxu1 %v1316_v42 }
 0x15d   :  { %v302_v8 = vmax.f32 %v254_v4, 0.0 }
 0x15e   :  { %v332_v9 = vpack.c.bf16 %v304_v6, %v303_v5 }
 0x15f   :  { %v331_v10 = vpack.c.bf16 %v302_v8, %v301_v7  ;;  %v1178_v11 = vpop.f32.mrb[8].mxu0  ;;  %1251 = vmatpush3.bf16.msra.mxu1 %v1316_v42  ;;  %v1054_v42 = vld [vmem:[%s1776_s6] ss:$0 sm:$0xff]  ;;  %s1560_s6 = smov [#allocation11]  }
 0x160   :  { %v275_v12 = vadd.f32 %v1178_v11, %v1036_v46  ;;  %v266_v13 = vpop.f32.mrb[9].mxu0  ;;  %1252 = vmatprep.subr.bf16.mxu1 %v1317_v43  ;;  %s1006_s14 = sshll.u32 %s1560_s6, 4  ;;  %s1007_s14 = int_to_ptr.vmem [resolvable:$true] %s1006_s14 }
 0x161   :  { %v267_v14 = vadd.f32 %v1036_v46, %v266_v13  ;;  %v1179_v15 = vpop.f32.mrb[10].mxu0  ;;  %1204 = vmatprep.mubr.bf16.mxu1 %v331_v10  ;;  %s1497_s19 = scalar_lea.vmem %s1007_s14, 2048  ;;  %p1502_p13 = scmp.lt.s32.totalorder %s1007_s14, %s1007_s14 }
 0x162   :  { %v278_v16 = vadd.f32 %v1179_v15, %v1036_v46  ;;  %v269_v17 = vpop.f32.mrb[11].mxu0  ;;  %1205 = vmatmul.mubr.bf16.gmra.mrb[4].mxu1 %v332_v9  ;;  %v307_v19 = vmax.f32 %v275_v12, 0.0  ;;  %p1498_p12 = scmp.ne.s32.totalorder %s1007_s14, %s1497_s19  ;;  %p1503_p0 = scmp.lt.s32.totalorder %s1497_s19, %s1497_s19 }
 0x163   :  { %v270_v18 = vadd.f32 %v1036_v46, %v269_v17  ;;  %v305_v21 = vmax.f32 %v267_v14, 0.0  ;;  %1253 = vmatpush3.bf16.msra.mxu1 %v1317_v43 }
 0x164   :  { %v308_v20 = vmax.f32 %v278_v16, 0.0  ;;  %1254 = vmatprep.subr.bf16.mxu1 %v1318_v44  ;;  %p1504_p1 = por %p1503_p0, %p1502_p13 }
 0x165   :  { %v306_v22 = vmax.f32 %v270_v18, 0.0 }
 0x166   :  { %v334_v23 = vpack.c.bf16 %v308_v20, %v307_v19  ;;  %p1505_p2 = pnand %p1504_p1, %p1498_p12 }
 0x167   :  { %v333_v24 = vpack.c.bf16 %v306_v22, %v305_v21  ;;  %v1182_v25 = vpop.f32.mrb[12].mxu0  ;;  %1255 = vmatpush3.bf16.msra.mxu1 %v1318_v44 }
 0x168   :  { %v291_v26 = vadd.f32 %v1182_v25, %v1036_v46  ;;  %v282_v27 = vpop.f32.mrb[13].mxu0  ;;  %1256 = vmatprep.subr.bf16.mxu1 %v1319_v45 }
 0x169   :  { %v283_v28 = vadd.f32 %v1036_v46, %v282_v27  ;;  %v1183_v29 = vpop.f32.mrb[14].mxu0  ;;  %1208 = vmatprep.mubr.bf16.mxu1 %v333_v24 }
 0x16a   :  { %v294_v30 = vadd.f32 %v1183_v29, %v1036_v46  ;;  %v285_v31 = vpop.f32.mrb[15].mxu0  ;;  %1209 = vmatmul.mubr.bf16.gmra.mrb[8].mxu1 %v334_v23  ;;  %v311_v33 = vmax.f32 %v291_v26, 0.0 }
 0x16b   :  { %v286_v32 = vadd.f32 %v1036_v46, %v285_v31  ;;  %v309_v35 = vmax.f32 %v283_v28, 0.0  ;;  %v1320_v46 = vld [vmem:[#allocation10 + $0x28] sm:$0xff]   ;;  %1257 = vmatpush3.bf16.msra.mxu1 %v1319_v45 }
 0x16c   :  { %v312_v34 = vmax.f32 %v294_v30, 0.0  ;;  %1258 = vmatprep.subr.bf16.mxu1 %v1320_v46 }
 0x16d   :  { %v310_v36 = vmax.f32 %v286_v32, 0.0 }
 0x16e   :  { %v336_v37 = vpack.c.bf16 %v312_v34, %v311_v33 }
 0x16f   :  { %v335_v38 = vpack.c.bf16 %v310_v36, %v309_v35  ;;  %1259 = vmatpush3.bf16.msra.mxu1 %v1320_v46 }
 0x170   :  { %1260 = vmatprep.subr.bf16.mxu1 %v1321_v40 }
 0x171   :  { %1212 = vmatprep.mubr.bf16.mxu1 %v335_v38 }
 0x172   :  { %1213 = vmatmul.mubr.bf16.gmra.mrb[12].mxu1 %v336_v37 }
 0x173   :  { %1261 = vmatpush3.bf16.msra.mxu1 %v1321_v40 }
 0x174   :  { %1262 = vmatprep.subr.bf16.mxu1 %v1322_v41 }
 0x177   :  { %1263 = vmatpush3.bf16.msra.mxu1 %v1322_v41 }
 0x22d   :  { %v1202_v48 = vpop.f32.mrb[0].mxu1 }
 0x22e   :  { %v435_v49 = vadd.f32 %v1202_v48, %v1698_v47  ;;  %v426_v50 = vpop.f32.mrb[1].mxu1 }
 0x22f   :  { %v427_v51 = vadd.f32 %v1698_v47, %v426_v50  ;;  %v1203_v52 = vpop.f32.mrb[2].mxu1 }
 0x230   :  { %v491_v53 = vmax.f32 %v435_v49, 0.0  ;;  %v438_v54 = vadd.f32 %v1203_v52, %v1698_v47  ;;  %v429_v55 = vpop.f32.mrb[3].mxu1 }
 0x231   :  { %v489_v56 = vmax.f32 %v427_v51, 0.0  ;;  %v430_v57 = vadd.f32 %v1698_v47, %v429_v55 }
 0x232   :  { %507 = vst [vmem:[#allocation11 + $0x10] sm:$0xff] %v491_v53  ;;  %v492_v58 = vmax.f32 %v438_v54, 0.0 }
 0x233   :  { %505 = vst [vmem:[#allocation11] sm:$0xff] %v489_v56  ;;  %v490_v59 = vmax.f32 %v430_v57, 0.0 }
 0x234   :  { %508 = vst [vmem:[#allocation11 + $0x18] sm:$0xff] %v492_v58  ;;  %v538_v60 = vpack.c.bf16 %v492_v58, %v491_v53 }
 0x235   :  { %506 = vst [vmem:[#allocation11 + $0x8] sm:$0xff] %v490_v59  ;;  %v537_v61 = vpack.c.bf16 %v490_v59, %v489_v56  ;;  %v1206_v62 = vpop.f32.mrb[4].mxu1 }
 0x236   :  { %v451_v63 = vadd.f32 %v1206_v62, %v1698_v47  ;;  %v442_v0 = vpop.f32.mrb[5].mxu1 }
 0x237   :  { %v443_v1 = vadd.f32 %v1698_v47, %v442_v0  ;;  %v1207_v2 = vpop.f32.mrb[6].mxu1  ;;  %1232 = vmatprep.mubr.bf16.mxu0 %v537_v61 }
 0x238   :  { %v495_v3 = vmax.f32 %v451_v63, 0.0  ;;  %v454_v4 = vadd.f32 %v1207_v2, %v1698_v47  ;;  %v445_v5 = vpop.f32.mrb[7].mxu1  ;;  %1233 = vmatmul.mubr.bf16.vlgmr.msra.gmra.mrb[16].mxu0 %v538_v60 }
 0x239   :  { %v493_v6 = vmax.f32 %v443_v1, 0.0  ;;  %v446_v7 = vadd.f32 %v1698_v47, %v445_v5 }
 0x23a   :  { %511 = vst [vmem:[#allocation11 + $0x30] sm:$0xff] %v495_v3  ;;  %v496_v8 = vmax.f32 %v454_v4, 0.0 }
 0x23b   :  { %509 = vst [vmem:[#allocation11 + $0x20] sm:$0xff] %v493_v6  ;;  %v494_v9 = vmax.f32 %v446_v7, 0.0 }
 0x23c   :  { %512 = vst [vmem:[#allocation11 + $0x38] sm:$0xff] %v496_v8  ;;  %v540_v10 = vpack.c.bf16 %v496_v8, %v495_v3 }
 0x23d   :  { %510 = vst [vmem:[#allocation11 + $0x28] sm:$0xff] %v494_v9  ;;  %v539_v11 = vpack.c.bf16 %v494_v9, %v493_v6  ;;  %v1210_v12 = vpop.f32.mrb[8].mxu1 }
 0x23e   :  { %v467_v13 = vadd.f32 %v1210_v12, %v1698_v47  ;;  %v458_v14 = vpop.f32.mrb[9].mxu1 }
 0x23f   :  { %v459_v15 = vadd.f32 %v1698_v47, %v458_v14  ;;  %v1211_v16 = vpop.f32.mrb[10].mxu1  ;;  %1236 = vmatprep.mubr.bf16.mxu0 %v539_v11 }
 0x240   :  { %v499_v17 = vmax.f32 %v467_v13, 0.0  ;;  %v470_v18 = vadd.f32 %v1211_v16, %v1698_v47  ;;  %v461_v19 = vpop.f32.mrb[11].mxu1  ;;  %1237 = vmatmul.mubr.bf16.gmra.mrb[20].mxu0 %v540_v10 }
 0x241   :  { %v497_v20 = vmax.f32 %v459_v15, 0.0  ;;  %v462_v21 = vadd.f32 %v1698_v47, %v461_v19 }
 0x242   :  { %515 = vst [vmem:[#allocation11 + $0x50] sm:$0xff] %v499_v17  ;;  %v500_v22 = vmax.f32 %v470_v18, 0.0 }
 0x243   :  { %513 = vst [vmem:[#allocation11 + $0x40] sm:$0xff] %v497_v20  ;;  %v498_v23 = vmax.f32 %v462_v21, 0.0 }
 0x244   :  { %516 = vst [vmem:[#allocation11 + $0x58] sm:$0xff] %v500_v22  ;;  %v542_v24 = vpack.c.bf16 %v500_v22, %v499_v17 }
 0x245   :  { %514 = vst [vmem:[#allocation11 + $0x48] sm:$0xff] %v498_v23  ;;  %v541_v25 = vpack.c.bf16 %v498_v23, %v497_v20  ;;  %v1214_v26 = vpop.f32.mrb[12].mxu1 }
 0x246   :  { %v483_v27 = vadd.f32 %v1214_v26, %v1698_v47  ;;  %v474_v28 = vpop.f32.mrb[13].mxu1 }
 0x247   :  { %v475_v29 = vadd.f32 %v1698_v47, %v474_v28  ;;  %v1215_v30 = vpop.f32.mrb[14].mxu1  ;;  %1240 = vmatprep.mubr.bf16.mxu0 %v541_v25 }
 0x248   :  { %v503_v31 = vmax.f32 %v483_v27, 0.0  ;;  %v486_v32 = vadd.f32 %v1215_v30, %v1698_v47  ;;  %v477_v33 = vpop.f32.mrb[15].mxu1  ;;  %1241 = vmatmul.mubr.bf16.gmra.mrb[24].mxu0 %v542_v24 }
 0x249   :  { %v501_v34 = vmax.f32 %v475_v29, 0.0  ;;  %v478_v35 = vadd.f32 %v1698_v47, %v477_v33 }
 0x24a   :  { %519 = vst [vmem:[#allocation11 + $0x70] sm:$0xff] %v503_v31  ;;  %v504_v36 = vmax.f32 %v486_v32, 0.0 }
 0x24b   :  { %517 = vst [vmem:[#allocation11 + $0x60] sm:$0xff] %v501_v34  ;;  %v502_v37 = vmax.f32 %v478_v35, 0.0 }
 0x24c   :  { %520 = vst [vmem:[#allocation11 + $0x78] sm:$0xff] %v504_v36  ;;  %v544_v38 = vpack.c.bf16 %v504_v36, %v503_v31 }
 0x24d   :  { %518 = vst [vmem:[#allocation11 + $0x68] sm:$0xff] %v502_v37  ;;  %v543_v39 = vpack.c.bf16 %v502_v37, %v501_v34 }
 0x24f   :  { %1244 = vmatprep.mubr.bf16.mxu0 %v543_v39 }
 0x250   :  { %1245 = vmatmul.mubr.bf16.gmra.mrb[28].mxu0 %v544_v38 }
 0x30b   :  { %v1234_v43 = vpop.f32.mrb[16].mxu0 }
 0x30c   :  { %v643_v44 = vadd.f32 %v1234_v43, %v1054_v42  ;;  %v634_v45 = vpop.f32.mrb[17].mxu0 }
 0x30d   :  { %v635_v46 = vadd.f32 %v1054_v42, %v634_v45  ;;  %v1235_v47 = vpop.f32.mrb[18].mxu0 }
 0x30e   :  { %v646_v48 = vadd.f32 %v1235_v47, %v1054_v42  ;;  %v637_v49 = vpop.f32.mrb[19].mxu0  ;;  %v699_v51 = vmax.f32 %v643_v44, 0.0 }
 0x30f   :  { %v638_v50 = vadd.f32 %v1054_v42, %v637_v49  ;;  %v697_v53 = vmax.f32 %v635_v46, 0.0 }
 0x310   :  { %v700_v52 = vmax.f32 %v646_v48, 0.0 }
 0x311   :  { %v698_v54 = vmax.f32 %v638_v50, 0.0 }
 0x312   :  { %v730_v55 = vpack.c.bf16 %v700_v52, %v699_v51 }
 0x313   :  { %v729_v56 = vpack.c.bf16 %v698_v54, %v697_v53  ;;  %v1238_v57 = vpop.f32.mrb[20].mxu0 }
 0x314   :  { %v659_v58 = vadd.f32 %v1238_v57, %v1054_v42  ;;  %v650_v59 = vpop.f32.mrb[21].mxu0 }
 0x315   :  { %v651_v60 = vadd.f32 %v1054_v42, %v650_v59  ;;  %v1239_v61 = vpop.f32.mrb[22].mxu0  ;;  %1264 = vmatprep.mubr.bf16.mxu1 %v729_v56 }
 0x316   :  { %v662_v62 = vadd.f32 %v1239_v61, %v1054_v42  ;;  %v653_v63 = vpop.f32.mrb[23].mxu0  ;;  %1265 = vmatmul.mubr.bf16.vlgmr.msra.gmra.mrb[16].mxu1 %v730_v55  ;;  %v703_v1 = vmax.f32 %v659_v58, 0.0 }
 0x317   :  { %v654_v0 = vadd.f32 %v1054_v42, %v653_v63  ;;  %v701_v3 = vmax.f32 %v651_v60, 0.0 }
 0x318   :  { %v704_v2 = vmax.f32 %v662_v62, 0.0 }
 0x319   :  { %v702_v4 = vmax.f32 %v654_v0, 0.0 }
 0x31a   :  { %v732_v5 = vpack.c.bf16 %v704_v2, %v703_v1 }
 0x31b   :  { %v731_v6 = vpack.c.bf16 %v702_v4, %v701_v3  ;;  %v1242_v7 = vpop.f32.mrb[24].mxu0 }
 0x31c   :  { %v675_v8 = vadd.f32 %v1242_v7, %v1054_v42  ;;  %v666_v9 = vpop.f32.mrb[25].mxu0 }
 0x31d   :  { %v667_v10 = vadd.f32 %v1054_v42, %v666_v9  ;;  %v1243_v11 = vpop.f32.mrb[26].mxu0  ;;  %1268 = vmatprep.mubr.bf16.mxu1 %v731_v6 }
 0x31e   :  { %v678_v12 = vadd.f32 %v1243_v11, %v1054_v42  ;;  %v669_v13 = vpop.f32.mrb[27].mxu0  ;;  %1269 = vmatmul.mubr.bf16.gmra.mrb[20].mxu1 %v732_v5  ;;  %v707_v15 = vmax.f32 %v675_v8, 0.0 }
 0x31f   :  { %v670_v14 = vadd.f32 %v1054_v42, %v669_v13  ;;  %v705_v17 = vmax.f32 %v667_v10, 0.0 }
 0x320   :  { %v708_v16 = vmax.f32 %v678_v12, 0.0 }
 0x321   :  { %v706_v18 = vmax.f32 %v670_v14, 0.0 }
 0x322   :  { %v734_v19 = vpack.c.bf16 %v708_v16, %v707_v15 }
 0x323   :  { %v733_v20 = vpack.c.bf16 %v706_v18, %v705_v17  ;;  %v1246_v21 = vpop.f32.mrb[28].mxu0 }
 0x324   :  { %v691_v22 = vadd.f32 %v1246_v21, %v1054_v42  ;;  %v682_v23 = vpop.f32.mrb[29].mxu0 }
 0x325   :  { %v683_v24 = vadd.f32 %v1054_v42, %v682_v23  ;;  %v1247_v25 = vpop.f32.mrb[30].mxu0  ;;  %1272 = vmatprep.mubr.bf16.mxu1 %v733_v20 }
 0x326   :  { %v694_v26 = vadd.f32 %v1247_v25, %v1054_v42  ;;  %v685_v27 = vpop.f32.mrb[31].mxu0  ;;  %1273 = vmatmul.mubr.bf16.gmra.mrb[24].mxu1 %v734_v19  ;;  %v711_v29 = vmax.f32 %v691_v22, 0.0 }
 0x327   :  { %v686_v28 = vadd.f32 %v1054_v42, %v685_v27  ;;  %v709_v31 = vmax.f32 %v683_v24, 0.0 }
 0x328   :  { %v712_v30 = vmax.f32 %v694_v26, 0.0 }
 0x329   :  { %v710_v32 = vmax.f32 %v686_v28, 0.0 }
 0x32a   :  { %v736_v33 = vpack.c.bf16 %v712_v30, %v711_v29 }
 0x32b   :  { %v735_v34 = vpack.c.bf16 %v710_v32, %v709_v31 }
 0x32d   :  { %1276 = vmatprep.mubr.bf16.mxu1 %v735_v34 }
 0x32e   :  { %1277 = vmatmul.mubr.bf16.gmra.mrb[28].mxu1 %v736_v33 }
 0x32f   :  { %1508 = shalt.err (!%p1505_p2)
}
 0x330   :  { %s1509_s22 = scalar_lea.hbm %s1779_s9, 2048 }
 0x331   :  { %p1510_p3 = scmp.ne.s32.totalorder %s1779_s9, %s1509_s22  ;;  %p1513_p4 = scmp.lt.u32.totalorder %s1509_s22, %s1779_s9 }
 0x333   :  { %p1515_p5 = pnand %p1513_p4, %p1510_p3 }
 0x335   :  { %1518 = shalt.err (!%p1515_p5)
}
 0x336   :  { %1012 = dma.vmem_to_hbm [thread:$0]  %s1007_s14, 2048, %s1779_s9, [#allocation4], %s1556_s5, %s1556_s5, %s1557_s28  }
 0x337   :  { %v1737_v35 = vld [vmem:[%s1778_s8] ss:$0 sm:$0xff]  ;;  %s1561_s8 = smov [#allocation12]  }
 0x338   :  { %s1018_s9 = sshll.u32 %s1561_s8, 4  ;;  %s1019_s9 = int_to_ptr.vmem [resolvable:$true] %s1018_s9 }
 0x339   :  { %s1519_s13 = scalar_lea.vmem %s1019_s9, 2048  ;;  %p1524_p7 = scmp.lt.s32.totalorder %s1019_s9, %s1019_s9 }
 0x33a   :  { %p1520_p6 = scmp.ne.s32.totalorder %s1019_s9, %s1519_s13  ;;  %p1525_p8 = scmp.lt.s32.totalorder %s1519_s13, %s1519_s13 }
 0x33c   :  { %p1526_p9 = por %p1525_p8, %p1524_p7 }
 0x33e   :  { %p1527_p10 = pnand %p1526_p9, %p1520_p6 }
 0x3e9   :  { %v1266_v36 = vpop.f32.mrb[16].mxu1 }
 0x3ea   :  { %v835_v37 = vadd.f32 %v1266_v36, %v1737_v35  ;;  %v826_v38 = vpop.f32.mrb[17].mxu1 }
 0x3eb   :  { %v827_v39 = vadd.f32 %v1737_v35, %v826_v38  ;;  %v1267_v40 = vpop.f32.mrb[18].mxu1 }
 0x3ec   :  { %v1074_v41 = vmul.f32 -1.442695, %v835_v37  ;;  %v838_v42 = vadd.f32 %v1267_v40, %v1737_v35  ;;  %v829_v43 = vpop.f32.mrb[19].mxu1 }
 0x3ed   :  { %v1072_v44 = vmul.f32 -1.442695, %v827_v39  ;;  %v830_v45 = vadd.f32 %v1737_v35, %v829_v43 }
 0x3ee   :  { %1323 = vpow2.f32 %v1074_v41  ;;  %v1075_v46 = vmul.f32 -1.442695, %v838_v42 }
 0x3ef   :  { %1325 = vpow2.f32 %v1072_v44  ;;  %v1073_v47 = vmul.f32 -1.442695, %v830_v45 }
 0x3f0   :  { %1327 = vpow2.f32 %v1075_v46 }
 0x3f1   :  { %1329 = vpow2.f32 %v1073_v47  ;;  %v1270_v48 = vpop.f32.mrb[20].mxu1 }
 0x3f2   :  { %v851_v49 = vadd.f32 %v1270_v48, %v1737_v35  ;;  %v842_v50 = vpop.f32.mrb[21].mxu1 }
 0x3f3   :  { %v843_v51 = vadd.f32 %v1737_v35, %v842_v50  ;;  %v1271_v52 = vpop.f32.mrb[22].mxu1 }
 0x3f4   :  { %v1078_v53 = vmul.f32 -1.442695, %v851_v49  ;;  %v854_v54 = vadd.f32 %v1271_v52, %v1737_v35  ;;  %v845_v55 = vpop.f32.mrb[23].mxu1 }
 0x3f5   :  { %v1076_v56 = vmul.f32 -1.442695, %v843_v51  ;;  %v846_v57 = vadd.f32 %v1737_v35, %v845_v55 }
 0x3f6   :  { %1331 = vpow2.f32 %v1078_v53  ;;  %v1079_v58 = vmul.f32 -1.442695, %v854_v54 }
 0x3f7   :  { %1333 = vpow2.f32 %v1076_v56  ;;  %v1077_v59 = vmul.f32 -1.442695, %v846_v57 }
 0x3f8   :  { %v1324_v60 = vpop.eup %1323  ;;  %1335 = vpow2.f32 %v1079_v58 }
 0x3f9   :  { %v1326_v61 = vpop.eup %1325  ;;  %v939_v62 = vadd.f32 1.0, %v1324_v60  ;;  %1337 = vpow2.f32 %v1077_v59  ;;  %v1274_v63 = vpop.f32.mrb[24].mxu1 }
 0x3fa   :  { %v1328_v0 = vpop.eup %1327  ;;  %v937_v1 = vadd.f32 1.0, %v1326_v61  ;;  %v867_v2 = vadd.f32 %v1274_v63, %v1737_v35  ;;  %v858_v3 = vpop.f32.mrb[25].mxu1 }
 0x3fb   :  { %v1330_v4 = vpop.eup %1329  ;;  %1339 = vrcp.f32 %v939_v62  ;;  %v940_v5 = vadd.f32 1.0, %v1328_v0  ;;  %v859_v6 = vadd.f32 %v1737_v35, %v858_v3  ;;  %v1275_v7 = vpop.f32.mrb[26].mxu1 }
 0x3fc   :  { %1341 = vrcp.f32 %v937_v1  ;;  %v938_v8 = vadd.f32 1.0, %v1330_v4  ;;  %v1082_v9 = vmul.f32 -1.442695, %v867_v2  ;;  %v870_v10 = vadd.f32 %v1275_v7, %v1737_v35  ;;  %v861_v11 = vpop.f32.mrb[27].mxu1 }
 0x3fd   :  { %1343 = vrcp.f32 %v940_v5  ;;  %v1080_v12 = vmul.f32 -1.442695, %v859_v6  ;;  %v862_v13 = vadd.f32 %v1737_v35, %v861_v11 }
 0x3fe   :  { %1345 = vrcp.f32 %v938_v8  ;;  %v1083_v14 = vmul.f32 -1.442695, %v870_v10 }
 0x3ff   :  { %1347 = vpow2.f32 %v1082_v9  ;;  %v1081_v15 = vmul.f32 -1.442695, %v862_v13 }
 0x400   :  { %v1332_v16 = vpop.eup %1331  ;;  %1349 = vpow2.f32 %v1080_v12 }
 0x401   :  { %v1334_v17 = vpop.eup %1333  ;;  %v943_v18 = vadd.f32 1.0, %v1332_v16  ;;  %1351 = vpow2.f32 %v1083_v14  ;;  %v1278_v19 = vpop.f32.mrb[28].mxu1 }
 0x402   :  { %v1336_v20 = vpop.eup %1335  ;;  %v941_v21 = vadd.f32 1.0, %v1334_v17  ;;  %1353 = vpow2.f32 %v1081_v15  ;;  %v883_v22 = vadd.f32 %v1278_v19, %v1737_v35  ;;  %v874_v23 = vpop.f32.mrb[29].mxu1 }
 0x403   :  { %v1338_v24 = vpop.eup %1337  ;;  %1355 = vrcp.f32 %v943_v18  ;;  %v944_v25 = vadd.f32 1.0, %v1336_v20  ;;  %v875_v26 = vadd.f32 %v1737_v35, %v874_v23  ;;  %v1279_v27 = vpop.f32.mrb[30].mxu1 }
 0x404   :  { %1357 = vrcp.f32 %v941_v21  ;;  %v942_v28 = vadd.f32 1.0, %v1338_v24  ;;  %v1086_v29 = vmul.f32 -1.442695, %v883_v22  ;;  %v886_v30 = vadd.f32 %v1279_v27, %v1737_v35  ;;  %v877_v31 = vpop.f32.mrb[31].mxu1 }
 0x405   :  { %v1340_v32 = vpop.eup %1339  ;;  %1359 = vrcp.f32 %v944_v25  ;;  %v1084_v33 = vmul.f32 -1.442695, %v875_v26  ;;  %v878_v34 = vadd.f32 %v1737_v35, %v877_v31 }
 0x406   :  { %v1342_v36 = vpop.eup %1341  ;;  %987 = vst [vmem:[#allocation12 + $0x10] sm:$0xff] %v1340_v32  ;;  %1361 = vrcp.f32 %v942_v28  ;;  %v1087_v37 = vmul.f32 -1.442695, %v886_v30 }
 0x407   :  { %v1344_v38 = vpop.eup %1343  ;;  %985 = vst [vmem:[#allocation12] sm:$0xff] %v1342_v36  ;;  %1363 = vpow2.f32 %v1086_v29  ;;  %v1085_v39 = vmul.f32 -1.442695, %v878_v34 }
 0x408   :  { %v1346_v40 = vpop.eup %1345  ;;  %988 = vst [vmem:[#allocation12 + $0x18] sm:$0xff] %v1344_v38  ;;  %1365 = vpow2.f32 %v1084_v33 }
 0x409   :  { %v1348_v41 = vpop.eup %1347  ;;  %986 = vst [vmem:[#allocation12 + $0x8] sm:$0xff] %v1346_v40  ;;  %1367 = vpow2.f32 %v1087_v37 }
 0x40a   :  { %v1350_v42 = vpop.eup %1349  ;;  %v947_v43 = vadd.f32 1.0, %v1348_v41  ;;  %1369 = vpow2.f32 %v1085_v39 }
 0x40b   :  { %v1352_v44 = vpop.eup %1351  ;;  %v945_v45 = vadd.f32 1.0, %v1350_v42 }
 0x40c   :  { %v1354_v35 = vpop.eup %1353  ;;  %1371 = vrcp.f32 %v947_v43  ;;  %v948_v46 = vadd.f32 1.0, %v1352_v44 }
 0x40d   :  { %v1356_v47 = vpop.eup %1355  ;;  %1373 = vrcp.f32 %v945_v45  ;;  %v946_v48 = vadd.f32 1.0, %v1354_v35 }
 0x40e   :  { %v1358_v49 = vpop.eup %1357  ;;  %991 = vst [vmem:[#allocation12 + $0x30] sm:$0xff] %v1356_v47  ;;  %1375 = vrcp.f32 %v948_v46 }
 0x40f   :  { %v1360_v50 = vpop.eup %1359  ;;  %989 = vst [vmem:[#allocation12 + $0x20] sm:$0xff] %v1358_v49  ;;  %1377 = vrcp.f32 %v946_v48 }
 0x410   :  { %v1362_v51 = vpop.eup %1361  ;;  %992 = vst [vmem:[#allocation12 + $0x38] sm:$0xff] %v1360_v50 }
 0x411   :  { %v1364_v52 = vpop.eup %1363  ;;  %990 = vst [vmem:[#allocation12 + $0x28] sm:$0xff] %v1362_v51 }
 0x412   :  { %v1366_v53 = vpop.eup %1365  ;;  %v951_v54 = vadd.f32 1.0, %v1364_v52 }
 0x413   :  { %v1368_v55 = vpop.eup %1367  ;;  %v949_v56 = vadd.f32 1.0, %v1366_v53 }
 0x414   :  { %v1370_v57 = vpop.eup %1369  ;;  %1379 = vrcp.f32 %v951_v54  ;;  %v952_v58 = vadd.f32 1.0, %v1368_v55 }
 0x415   :  { %1381 = vrcp.f32 %v949_v56  ;;  %v950_v59 = vadd.f32 1.0, %v1370_v57 }
 0x416   :  { %v1372_v60 = vpop.eup %1371  ;;  %1383 = vrcp.f32 %v952_v58 }
 0x417   :  { %v1374_v61 = vpop.eup %1373  ;;  %995 = vst [vmem:[#allocation12 + $0x50] sm:$0xff] %v1372_v60  ;;  %1385 = vrcp.f32 %v950_v59 }
 0x418   :  { %v1376_v62 = vpop.eup %1375  ;;  %993 = vst [vmem:[#allocation12 + $0x40] sm:$0xff] %v1374_v61 }
 0x419   :  { %v1378_v63 = vpop.eup %1377  ;;  %996 = vst [vmem:[#allocation12 + $0x58] sm:$0xff] %v1376_v62 }
 0x41a   :  { %994 = vst [vmem:[#allocation12 + $0x48] sm:$0xff] %v1378_v63 }
 0x41e   :  { %v1380_v0 = vpop.eup %1379 }
 0x41f   :  { %v1382_v1 = vpop.eup %1381  ;;  %999 = vst [vmem:[#allocation12 + $0x70] sm:$0xff] %v1380_v0 }
 0x420   :  { %v1384_v2 = vpop.eup %1383  ;;  %997 = vst [vmem:[#allocation12 + $0x60] sm:$0xff] %v1382_v1 }
 0x421   :  { %v1386_v3 = vpop.eup %1385  ;;  %1000 = vst [vmem:[#allocation12 + $0x78] sm:$0xff] %v1384_v2 }
 0x422   :  { %998 = vst [vmem:[#allocation12 + $0x68] sm:$0xff] %v1386_v3 }
 0x423   :  { %1530 = shalt.err (!%p1527_p10)
}
 0x424   :  { %s1531_s1 = scalar_lea.hbm %s1780_s10, 2048 }
 0x425   :  { %p1532_p11 = scmp.ne.s32.totalorder %s1780_s10, %s1531_s1  ;;  %p1535_p12 = scmp.lt.u32.totalorder %s1531_s1, %s1780_s10 }
 0x427   :  { %p1537_p13 = pnand %p1535_p12, %p1532_p11 }
 0x429   :  { %1540 = shalt.err (!%p1537_p13)
}
 0x42a   :  { %1024 = dma.vmem_to_hbm [thread:$0]  %s1019_s9, 2048, %s1780_s10, [#allocation13], %s1556_s5, %s1556_s5, %s1557_s28  }
 0x42b   :  { %1547 = dma.done.wait [#allocation4], 2048  }
 0x42c   :  { %1548 = vsyncadd [#allocation4], 4294965248 }
 0x42d   :  { %1549 = dma.done.wait [#allocation13], 2048  }
 0x42e   :  { %1550 = vsyncadd [#allocation13], 4294965248 }
 0x42f   :  { %1031 = vsyncpa [#allocation3], 1 }
 0x430   :  { %1032 = vsyncpa [#allocation6], 1 }
 0x431   :  { %1033 = vsyncpa [#allocation9], 1 }
 0x432   :  { %1034 = vsyncpa [#allocation4], 1 }
 0x433   :  { %1035 = vsyncpa [#allocation13], 1 }

</bundles_post_ra>
